<compile_context>
chip_gen: v7x
topology: tpu7x:2x2x1
jax: 0.10.0
libtpu: 0.0.40
codegen_flags: <defaults>
</compile_context>

<pallas_src>
import functools

import jax
import jax.numpy as jnp
from jax.experimental import pallas as pl
from jax.experimental.pallas import tpu as pltpu


def _round_up(x, m):
    return (x + m - 1) // m * m


def attention_kernel(enc_ref, dec_ref, we_ref, be_ref, wd_ref, bd_ref,
                     wf_ref, bf_ref, awe_ref, alpha_ref, *, n_real):
    # enc_ref : (TB, Np, Fp) bf16   encoder_out tile (zero padded)
    # dec_ref : (TB, Dp)     bf16   decoder_hidden tile
    # we_ref  : (Fp, Ap)     bf16   encoder_att weight (in, out)
    # be_ref  : (1, Ap)      f32    encoder_att bias
    # wd_ref  : (Dp, Ap)     bf16   decoder_att weight (in, out)
    # bd_ref  : (1, Ap)      f32    decoder_att bias
    # wf_ref  : (1, Ap)      f32    full_att weight
    # bf_ref  : (1,)         f32    full_att bias (SMEM scalar)
    # awe_ref : (TB, 1, Fp)  f32    attention-weighted encoding (out)
    # alpha_ref: (TB, Np)    f32    attention weights (out)
    tb, n_pad, f_pad = enc_ref.shape
    a_pad = we_ref.shape[1]

    enc = enc_ref[...]                                    # bf16, no f32 copy

    # att1 = encoder_att(encoder_out): MXU, bf16 in / f32 accumulate.
    att1 = jnp.dot(enc.reshape(tb * n_pad, f_pad), we_ref[...],
                   preferred_element_type=jnp.float32)
    att1 = att1.reshape(tb, n_pad, a_pad) + be_ref[...]

    # att2 = decoder_att(decoder_hidden): MXU.
    att2 = jnp.dot(dec_ref[...], wd_ref[...],
                   preferred_element_type=jnp.float32) + bd_ref[...]

    # relu(att1 + att2.unsqueeze(1))
    h = jnp.maximum(att1 + att2[:, None, :], 0.0)         # (TB, Np, Ap) f32

    # full_att(...).squeeze(2): lane multiply + lane-reduce over A keeps N on
    # the lane axis (layout the softmax + MXU matvec below need).
    scores = jnp.sum(h * wf_ref[...], axis=-1) + bf_ref[0]    # (TB, Np)

    # Mask padded pixel columns before the softmax (static check).
    if n_real < n_pad:
        col = jax.lax.broadcasted_iota(jnp.int32, (tb, n_pad), 1)
        scores = jnp.where(col < n_real, scores, -1e30)

    # softmax over num_pixels; reciprocal on the EUP.
    m = jnp.max(scores, axis=-1, keepdims=True)
    e = jnp.exp(scores - m)
    denom = jnp.sum(e, axis=-1, keepdims=True)
    alpha = e * pl.reciprocal(denom, approx=True)         # (TB, Np) f32
    alpha_ref[...] = alpha

    # (encoder_out * alpha.unsqueeze(2)).sum(dim=1) as an MXU batched matvec:
    # per batch (1, N) @ (N, F) -> (1, F).
    aw = alpha.astype(enc.dtype)[:, None, :]              # (TB, 1, Np) bf16
    awe_ref[...] = jnp.einsum('bqn,bnf->bqf', aw, enc,
                              preferred_element_type=jnp.float32)


def attention_forward(encoder_out, decoder_hidden, params, *,
                      tile_b=8, matmul_dtype=jnp.bfloat16):
    B, N, F = encoder_out.shape
    D = decoder_hidden.shape[1]
    A = params["we"].shape[1]

    b_pad = _round_up(B, tile_b)
    n_pad = _round_up(N, 128)
    f_pad = _round_up(F, 128)
    a_pad = _round_up(A, 128)
    d_pad = _round_up(D, 128)

    md = matmul_dtype
    enc = jnp.pad(encoder_out.astype(md),
                  ((0, b_pad - B), (0, n_pad - N), (0, f_pad - F)))
    dec = jnp.pad(decoder_hidden.astype(md),
                  ((0, b_pad - B), (0, d_pad - D)))
    we = jnp.pad(params["we"].astype(md), ((0, f_pad - F), (0, a_pad - A)))
    wd = jnp.pad(params["wd"].astype(md), ((0, d_pad - D), (0, a_pad - A)))
    be = jnp.pad(params["be"].astype(jnp.float32), ((0, 0), (0, a_pad - A)))
    bd = jnp.pad(params["bd"].astype(jnp.float32), ((0, 0), (0, a_pad - A)))
    wf = jnp.pad(params["wf"].astype(jnp.float32), ((0, 0), (0, a_pad - A)))
    bf = params["bf"].reshape(1).astype(jnp.float32)

    kernel = functools.partial(attention_kernel, n_real=N)

    awe3, alpha_p = pl.pallas_call(
        kernel,
        grid=(b_pad // tile_b,),
        in_specs=[
            pl.BlockSpec((tile_b, n_pad, f_pad), lambda b: (b, 0, 0)),  # enc
            pl.BlockSpec((tile_b, d_pad), lambda b: (b, 0)),            # dec
            pl.BlockSpec((f_pad, a_pad), lambda b: (0, 0)),             # we
            pl.BlockSpec((1, a_pad), lambda b: (0, 0)),                 # be
            pl.BlockSpec((d_pad, a_pad), lambda b: (0, 0)),             # wd
            pl.BlockSpec((1, a_pad), lambda b: (0, 0)),                 # bd
            pl.BlockSpec((1, a_pad), lambda b: (0, 0)),                 # wf
            pl.BlockSpec(memory_space=pltpu.MemorySpace.SMEM),          # bf
        ],
        out_specs=(
            pl.BlockSpec((tile_b, 1, f_pad), lambda b: (b, 0, 0)),
            pl.BlockSpec((tile_b, n_pad), lambda b: (b, 0)),
        ),
        out_shape=(
            jax.ShapeDtypeStruct((b_pad, 1, f_pad), jnp.float32),
            jax.ShapeDtypeStruct((b_pad, n_pad), jnp.float32),
        ),
        compiler_params=pltpu.CompilerParams(
            dimension_semantics=("parallel",),
            vmem_limit_bytes=40 * 1024 * 1024,
        ),
    )(enc, dec, we, be, wd, bd, wf, bf)

    return awe3[:B, 0, :F], alpha_p[:B, :N]


def init_params(key, features_dim, decoder_dim, attention_dim):
    """Deterministic PyTorch-Linear-style init (uniform +-1/sqrt(fan_in))."""
    ks = jax.random.split(key, 6)

    def unif(k, shape, fan_in):
        bound = 1.0 / jnp.sqrt(fan_in)
        return jax.random.uniform(k, shape, jnp.float32, -bound, bound)

    # PyTorch Linear stores weight as (out, in); we pre-transpose to (in, out).
    w_enc = unif(ks[0], (attention_dim, features_dim), features_dim)
    b_enc = unif(ks[1], (attention_dim,), features_dim)
    w_dec = unif(ks[2], (attention_dim, decoder_dim), decoder_dim)
    b_dec = unif(ks[3], (attention_dim,), decoder_dim)
    w_full = unif(ks[4], (1, attention_dim), attention_dim)
    b_full = unif(ks[5], (1,), attention_dim)
    return {
        "we": w_enc.T,                        # (F, A)
        "be": b_enc.reshape(1, attention_dim),
        "wd": w_dec.T,                        # (D, A)
        "bd": b_dec.reshape(1, attention_dim),
        "wf": w_full,                         # (1, A)
        "bf": b_full.reshape(1, 1),
    }


def attention_reference(encoder_out, decoder_hidden, params,
                        matmul_dtype=jnp.float32):
    """Pure-JAX reference; matmul_dtype selects the matmul input precision."""
    md = matmul_dtype
    att1 = jnp.dot(encoder_out.astype(md), params["we"].astype(md),
                   preferred_element_type=jnp.float32) + params["be"]
    att2 = jnp.dot(decoder_hidden.astype(md), params["wd"].astype(md),
                   preferred_element_type=jnp.float32) + params["bd"]
    h = jnp.maximum(att1 + att2[:, None, :], 0.0)
    scores = jnp.sum(h * params["wf"], axis=-1) + params["bf"]
    alpha = jax.nn.softmax(scores, axis=1)
    awe = jnp.einsum('bn,bnf->bf', alpha.astype(md), encoder_out.astype(md),
                     preferred_element_type=jnp.float32)
    return awe, alpha


if __name__ == "__main__":
    key = jax.random.PRNGKey(0)

    def run_case(B, N, F, D, A, case_key):
        k_enc, k_dec, k_par = jax.random.split(case_key, 3)
        enc = jax.random.normal(k_enc, (B, N, F), jnp.float32)
        dec = jax.random.normal(k_dec, (B, D), jnp.float32)
        params = init_params(k_par, F, D, A)

        awe, alpha = attention_forward(enc, dec, params)
        jax.block_until_ready((awe, alpha))

        # Reference with the same precision policy (bf16 matmul inputs).
        awe_m, alpha_m = attention_reference(enc, dec, params, jnp.bfloat16)
        # Full-f32 reference (PyTorch semantics), looser tolerance for bf16.
        awe_f, alpha_f = attention_reference(enc, dec, params, jnp.float32)

        assert awe.shape == (B, F) and alpha.shape == (B, N)
        assert jnp.allclose(alpha, alpha_m, atol=5e-3, rtol=5e-3)
        assert jnp.allclose(awe, awe_m, atol=5e-3, rtol=5e-3)
        assert jnp.allclose(alpha, alpha_f, atol=5e-2, rtol=5e-2)
        assert jnp.allclose(awe, awe_f, atol=5e-2, rtol=5e-2)
        assert jnp.allclose(jnp.sum(alpha, axis=1), 1.0, atol=1e-2)

    k1, k2 = jax.random.split(key)
    # Small, forward-consistent shapes (single batch tile).
    run_case(B=2, N=8, F=32, D=32, A=32, case_key=k1)
    # Larger case: >1 grid step, full padding + pixel-mask path exercised.
    run_case(B=16, N=100, F=40, D=48, A=24, case_key=k2)

    print("KERNEL_OK")
</pallas_src>

<mosaic_0001>
module attributes {stable_mosaic.version = 11 : i64} {
  func.func @attention_kernel(%arg0: i32, %arg1: memref<8x128x128xbf16, #tpu.memory_space<vmem>>, %arg2: memref<8x128xbf16, #tpu.memory_space<vmem>>, %arg3: memref<128x128xbf16, #tpu.memory_space<vmem>>, %arg4: memref<1x128xf32, #tpu.memory_space<vmem>>, %arg5: memref<128x128xbf16, #tpu.memory_space<vmem>>, %arg6: memref<1x128xf32, #tpu.memory_space<vmem>>, %arg7: memref<1x128xf32, #tpu.memory_space<vmem>>, %arg8: memref<1xf32, #tpu.memory_space<smem>>, %arg9: memref<8x1x128xf32, #tpu.memory_space<vmem>>, %arg10: memref<8x128xf32, #tpu.memory_space<vmem>>) attributes {dimension_semantics = [#tpu.dimension_semantics<parallel>], iteration_bounds = array<i64: 1>, scalar_prefetch = 0 : i64, scratch_operands = 0 : i64, tpu.core_type = #tpu.core_type<tc>, window_params = [{transform_indices = @transform_0, window_bounds = array<i64: 8, 128, 128>}, {transform_indices = @transform_1, window_bounds = array<i64: 8, 128>}, {pipeline_mode = #tpu.pipeline_mode<synchronous>, transform_indices = @transform_2, window_bounds = array<i64: 128, 128>}, {pipeline_mode = #tpu.pipeline_mode<synchronous>, transform_indices = @transform_3, window_bounds = array<i64: 1, 128>}, {pipeline_mode = #tpu.pipeline_mode<synchronous>, transform_indices = @transform_4, window_bounds = array<i64: 128, 128>}, {pipeline_mode = #tpu.pipeline_mode<synchronous>, transform_indices = @transform_5, window_bounds = array<i64: 1, 128>}, {pipeline_mode = #tpu.pipeline_mode<synchronous>, transform_indices = @transform_6, window_bounds = array<i64: 1, 128>}, {transform_indices = @transform_7, window_bounds = array<i64: 1>}, {transform_indices = @transform_8, window_bounds = array<i64: 8, 1, 128>}, {transform_indices = @transform_9, window_bounds = array<i64: 8, 128>}]} {
    %c0 = arith.constant 0 : index
    %c0_0 = arith.constant 0 : index
    %c0_1 = arith.constant 0 : index
    %0 = vector.load %arg1[%c0, %c0_0, %c0_1] : memref<8x128x128xbf16, #tpu.memory_space<vmem>>, vector<8x128x128xbf16>
    %1 = vector.shape_cast %0 : vector<8x128x128xbf16> to vector<1024x128xbf16>
    %c0_2 = arith.constant 0 : index
    %c0_3 = arith.constant 0 : index
    %2 = vector.load %arg3[%c0_2, %c0_3] : memref<128x128xbf16, #tpu.memory_space<vmem>>, vector<128x128xbf16>
    %cst = arith.constant dense<0.000000e+00> : vector<1024x128xf32>
    %3 = tpu.matmul %1, %2, %cst {dimension_numbers = #tpu.dot_dimension_numbers<[1], [0], [0], [1], [0, 0, 1, 1], [], []>} : vector<1024x128xbf16>, vector<128x128xbf16>, vector<1024x128xf32> -> vector<1024x128xf32>
    %4 = vector.shape_cast %3 : vector<1024x128xf32> to vector<8x128x128xf32>
    %c0_4 = arith.constant 0 : index
    %c0_5 = arith.constant 0 : index
    %5 = vector.load %arg4[%c0_4, %c0_5] : memref<1x128xf32, #tpu.memory_space<vmem>>, vector<1x128xf32>
    %6 = vector.shape_cast %5 : vector<1x128xf32> to vector<1x1x128xf32>
    %7 = vector.broadcast %6 : vector<1x1x128xf32> to vector<8x128x128xf32>
    %8 = arith.addf %4, %7 : vector<8x128x128xf32>
    %c0_6 = arith.constant 0 : index
    %c0_7 = arith.constant 0 : index
    %9 = vector.load %arg2[%c0_6, %c0_7] : memref<8x128xbf16, #tpu.memory_space<vmem>>, vector<8x128xbf16>
    %c0_8 = arith.constant 0 : index
    %c0_9 = arith.constant 0 : index
    %10 = vector.load %arg5[%c0_8, %c0_9] : memref<128x128xbf16, #tpu.memory_space<vmem>>, vector<128x128xbf16>
    %cst_10 = arith.constant dense<0.000000e+00> : vector<8x128xf32>
    %11 = tpu.matmul %9, %10, %cst_10 {dimension_numbers = #tpu.dot_dimension_numbers<[1], [0], [0], [1], [0, 0, 1, 1], [], []>} : vector<8x128xbf16>, vector<128x128xbf16>, vector<8x128xf32> -> vector<8x128xf32>
    %c0_11 = arith.constant 0 : index
    %c0_12 = arith.constant 0 : index
    %12 = vector.load %arg6[%c0_11, %c0_12] : memref<1x128xf32, #tpu.memory_space<vmem>>, vector<1x128xf32>
    %13 = vector.broadcast %12 : vector<1x128xf32> to vector<8x128xf32>
    %14 = arith.addf %11, %13 : vector<8x128xf32>
    %15 = vector.shape_cast %14 : vector<8x128xf32> to vector<8x1x128xf32>
    %16 = vector.broadcast %15 : vector<8x1x128xf32> to vector<8x128x128xf32>
    %17 = arith.addf %8, %16 : vector<8x128x128xf32>
    %cst_13 = arith.constant 0.000000e+00 : f32
    %18 = vector.broadcast %cst_13 : f32 to vector<8x128x128xf32>
    %19 = arith.maximumf %17, %18 : vector<8x128x128xf32>
    %c0_14 = arith.constant 0 : index
    %c0_15 = arith.constant 0 : index
    %20 = vector.load %arg7[%c0_14, %c0_15] : memref<1x128xf32, #tpu.memory_space<vmem>>, vector<1x128xf32>
    %21 = vector.shape_cast %20 : vector<1x128xf32> to vector<1x1x128xf32>
    %22 = vector.broadcast %21 : vector<1x1x128xf32> to vector<8x128x128xf32>
    %23 = arith.mulf %19, %22 : vector<8x128x128xf32>
    %cst_16 = arith.constant dense<0.000000e+00> : vector<8x128xf32>
    %24 = vector.multi_reduction <add>, %23, %cst_16 [2] : vector<8x128x128xf32> to vector<8x128xf32>
    %c0_17 = arith.constant 0 : index
    %25 = memref.load %arg8[%c0_17] : memref<1xf32, #tpu.memory_space<smem>>
    %26 = vector.broadcast %25 : f32 to vector<8x128xf32>
    %27 = arith.addf %24, %26 : vector<8x128xf32>
    %28 = tpu.iota {dimensions = array<i32: 1>} : vector<8x128xi32>
    %c8_i32 = arith.constant 8 : i32
    %29 = vector.broadcast %c8_i32 : i32 to vector<8x128xi32>
    %30 = arith.cmpi slt, %28, %29 : vector<8x128xi32>
    %cst_18 = arith.constant -1.000000e+30 : f32
    %31 = vector.broadcast %cst_18 : f32 to vector<8x128xf32>
    %32 = arith.select %30, %27, %31 : vector<8x128xi1>, vector<8x128xf32>
    %cst_19 = arith.constant dense<0xFF800000> : vector<8xf32>
    %33 = vector.multi_reduction <maximumf>, %32, %cst_19 [1] : vector<8x128xf32> to vector<8xf32>
    %34 = vector.shape_cast %33 : vector<8xf32> to vector<8x1xf32>
    %35 = vector.broadcast %34 : vector<8x1xf32> to vector<8x128xf32>
    %36 = arith.subf %32, %35 : vector<8x128xf32>
    %37 = math.exp %36 : vector<8x128xf32>
    %cst_20 = arith.constant dense<0.000000e+00> : vector<8xf32>
    %38 = vector.multi_reduction <add>, %37, %cst_20 [1] : vector<8x128xf32> to vector<8xf32>
    %39 = vector.shape_cast %38 : vector<8xf32> to vector<8x1xf32>
    %40 = tpu.reciprocal %39 {approx = true} : vector<8x1xf32> -> vector<8x1xf32>
    %41 = vector.broadcast %40 : vector<8x1xf32> to vector<8x128xf32>
    %42 = arith.mulf %37, %41 : vector<8x128xf32>
    %c0_21 = arith.constant 0 : index
    %c0_22 = arith.constant 0 : index
    %43 = vector.load %arg10[%c0_21, %c0_22] : memref<8x128xf32, #tpu.memory_space<vmem>>, vector<8x128xf32>
    tpu.vector_store %arg10[%c0_21, %c0_22], %42 {strides = array<i32>} : memref<8x128xf32, #tpu.memory_space<vmem>>, vector<8x128xf32>,
    %44 = arith.truncf %42 : vector<8x128xf32> to vector<8x128xbf16>
    %45 = vector.shape_cast %44 : vector<8x128xbf16> to vector<8x1x128xbf16>
    "tpu.trace_start"() <{level = 10 : i32, message = "bqn,bnf->bqf"}> : () -> ()
    %cst_23 = arith.constant dense<0.000000e+00> : vector<8x1x128xf32>
    %46 = tpu.matmul %45, %0, %cst_23 {dimension_numbers = #tpu.dot_dimension_numbers<[2], [1], [1], [2], [0, 0, 0, 1, 1, 2], [0], [0]>} : vector<8x1x128xbf16>, vector<8x128x128xbf16>, vector<8x1x128xf32> -> vector<8x1x128xf32>
    "tpu.trace_stop"() : () -> ()
    %c0_24 = arith.constant 0 : index
    %c0_25 = arith.constant 0 : index
    %c0_26 = arith.constant 0 : index
    %47 = vector.load %arg9[%c0_24, %c0_25, %c0_26] : memref<8x1x128xf32, #tpu.memory_space<vmem>>, vector<8x1x128xf32>
    tpu.vector_store %arg9[%c0_24, %c0_25, %c0_26], %46 {strides = array<i32>} : memref<8x1x128xf32, #tpu.memory_space<vmem>>, vector<8x1x128xf32>,
    return
  }
  func.func @transform_0(%arg0: i32) -> (i32, i32, i32) {
    %c0_i32 = arith.constant 0 : i32
    %c0_i32_0 = arith.constant 0 : i32
    %c0_i32_1 = arith.constant 0 : i32
    return %arg0, %c0_i32, %c0_i32_0 : i32, i32, i32
  }
  func.func @transform_1(%arg0: i32) -> (i32, i32) {
    %c0_i32 = arith.constant 0 : i32
    %c0_i32_0 = arith.constant 0 : i32
    return %arg0, %c0_i32 : i32, i32
  }
  func.func @transform_2(%arg0: i32) -> (i32, i32) {
    %c0_i32 = arith.constant 0 : i32
    %c0_i32_0 = arith.constant 0 : i32
    %c0_i32_1 = arith.constant 0 : i32
    return %c0_i32, %c0_i32_0 : i32, i32
  }
  func.func @transform_3(%arg0: i32) -> (i32, i32) {
    %c0_i32 = arith.constant 0 : i32
    %c0_i32_0 = arith.constant 0 : i32
    %c0_i32_1 = arith.constant 0 : i32
    return %c0_i32, %c0_i32_0 : i32, i32
  }
  func.func @transform_4(%arg0: i32) -> (i32, i32) {
    %c0_i32 = arith.constant 0 : i32
    %c0_i32_0 = arith.constant 0 : i32
    %c0_i32_1 = arith.constant 0 : i32
    return %c0_i32, %c0_i32_0 : i32, i32
  }
  func.func @transform_5(%arg0: i32) -> (i32, i32) {
    %c0_i32 = arith.constant 0 : i32
    %c0_i32_0 = arith.constant 0 : i32
    %c0_i32_1 = arith.constant 0 : i32
    return %c0_i32, %c0_i32_0 : i32, i32
  }
  func.func @transform_6(%arg0: i32) -> (i32, i32) {
    %c0_i32 = arith.constant 0 : i32
    %c0_i32_0 = arith.constant 0 : i32
    %c0_i32_1 = arith.constant 0 : i32
    return %c0_i32, %c0_i32_0 : i32, i32
  }
  func.func @transform_7(%arg0: i32) -> i32 {
    %c0_i32 = arith.constant 0 : i32
    %c0_i32_0 = arith.constant 0 : i32
    return %c0_i32 : i32
  }
  func.func @transform_8(%arg0: i32) -> (i32, i32, i32) {
    %c0_i32 = arith.constant 0 : i32
    %c0_i32_0 = arith.constant 0 : i32
    %c0_i32_1 = arith.constant 0 : i32
    return %arg0, %c0_i32, %c0_i32_0 : i32, i32, i32
  }
  func.func @transform_9(%arg0: i32) -> (i32, i32) {
    %c0_i32 = arith.constant 0 : i32
    %c0_i32_0 = arith.constant 0 : i32
    return %arg0, %c0_i32 : i32, i32
  }
}

</mosaic_0001>

<bundles_post_ra>
// kernel: tpu_custom_call.1
= control target key start
LH: loop header
LB: loop body
LE: loop exit
PB: predicated region body
PF: predicated region fallthrough
CT: control target
= control target key end

     0   :  { %16 = vsyncpa [#allocation4], 0  ;;  %s5891_s0 = inlined_call_operand.hbm [shape: bf16[8,128,128], index: 0, kind: input, shape index: {}]   ;;  %s5892_s1 = inlined_call_operand.vmem [shape: bf16[8,128], index: 1, kind: input, shape index: {}]   ;;  %s5893_s2 = inlined_call_operand.hbm [shape: bf16[128,128], index: 2, kind: input, shape index: {}]   ;;  %s5894_s3 = inlined_call_operand.vmem [shape: f32[1,128], index: 3, kind: input, shape index: {}]   ;;  %s5895_s4 = inlined_call_operand.hbm [shape: bf16[128,128], index: 4, kind: input, shape index: {}]   ;;  %s5896_s5 = inlined_call_operand.vmem [shape: f32[1,128], index: 5, kind: input, shape index: {}]   ;;  %s5897_s6 = inlined_call_operand.vmem [shape: f32[1,128], index: 6, kind: input, shape index: {}]   ;;  %s5898_s7 = inlined_call_operand.<no memory space> [shape: f32[1], index: 7, kind: input, shape index: {}]   ;;  %s5899_s8 = inlined_call_operand.hbm [shape: f32[8,1,128], index: 8, kind: output, shape index: {0}]   ;;  %s5900_s9 = inlined_call_operand.hbm [shape: f32[8,128], index: 9, kind: output, shape index: {1}]  }
   0x1   :  { %17 = vsyncpa [#allocation7], 0 }
   0x2   :  { %18 = vsyncpa [#allocation5], 0 }
   0x3   :  { %19 = vsyncpa [#allocation11], 0  ;;  %s4400_s30 = smov [#allocation6]   ;;  %s4401_s11 = smov [#allocation3]  }
   0x4   :  { %s39_s10 = sshll.u32 %s4400_s30, 4  ;;  %s25_s12 = sshll.u32 %s4401_s11, 4  ;;  %s40_s10 = int_to_ptr.vmem [resolvable:$true] %s39_s10  ;;  %s4462_s12 = int_to_ptr.vmem [resolvable:$true] %s25_s12 }
   0x5   :  { %s4282_s15 = scalar_lea.hbm %s5893_s2, 1024 }
   0x6   :  { %p4283_p0 = scmp.ne.s32.totalorder %s5893_s2, %s4282_s15  ;;  %p4286_p1 = scmp.lt.u32.totalorder %s4282_s15, %s5893_s2 }
   0x8   :  { %p4288_p2 = pnand %p4286_p1, %p4283_p0 }
   0xa   :  { %4291 = shalt.err (!%p4288_p2)
}
   0xb   :  { %s4292_s20 = scalar_lea.vmem %s40_s10, 1024  ;;  %p4297_p4 = scmp.lt.s32.totalorder %s40_s10, %s40_s10 }
   0xc   :  { %p4293_p3 = scmp.ne.s32.totalorder %s40_s10, %s4292_s20  ;;  %p4298_p5 = scmp.lt.s32.totalorder %s4292_s20, %s4292_s20 }
   0xe   :  { %p4299_p6 = por %p4298_p5, %p4297_p4 }
  0x10   :  { %p4300_p7 = pnand %p4299_p6, %p4293_p3 }
  0x12   :  { %4303 = shalt.err (!%p4300_p7)
}
  0x13   :  { %s4402_s21 = smov 64   ;;  %s4403_s22 = smov 4  }
  0x14   :  { %45 = dma.hbm_to_vmem [thread:$0]  %s5893_s2, 1024, %s40_s10, [#allocation7], %s4402_s21, %s4402_s21, %s4403_s22  }
  0x15   :  { %s4304_s27 = scalar_lea.hbm %s5891_s0, 8192 }
  0x16   :  { %p4305_p8 = scmp.ne.s32.totalorder %s5891_s0, %s4304_s27  ;;  %p4308_p9 = scmp.lt.u32.totalorder %s4304_s27, %s5891_s0 }
  0x18   :  { %p4310_p10 = pnand %p4308_p9, %p4305_p8 }
  0x1a   :  { %4313 = shalt.err (!%p4310_p10)
}
  0x1b   :  { %s4314_s13 = scalar_lea.vmem %s4462_s12, 8192  ;;  %p4319_p12 = scmp.lt.s32.totalorder %s4462_s12, %s4462_s12 }
  0x1c   :  { %p4315_p11 = scmp.ne.s32.totalorder %s4462_s12, %s4314_s13  ;;  %p4320_p13 = scmp.lt.s32.totalorder %s4314_s13, %s4314_s13 }
  0x1e   :  { %p4321_p0 = por %p4320_p13, %p4319_p12 }
  0x20   :  { %p4322_p1 = pnand %p4321_p0, %p4315_p11 }
  0x22   :  { %4325 = shalt.err (!%p4322_p1)
}
  0x23   :  { %31 = dma.hbm_to_vmem [thread:$0]  %s5891_s0, 8192, %s4462_s12, [#allocation4], %s4402_s21, %s4402_s21, %s4403_s22  }
  0x24   :  { %s4404_s14 = smov [#allocation8]   ;;  %s4326_s18 = scalar_lea.hbm %s5895_s4, 1024 }
  0x25   :  { %s53_s15 = sshll.u32 %s4404_s14, 4  ;;  %p4327_p2 = scmp.ne.s32.totalorder %s5895_s4, %s4326_s18  ;;  %s54_s15 = int_to_ptr.vmem [resolvable:$true] %s53_s15 }
  0x26   :  { %p4330_p3 = scmp.lt.u32.totalorder %s4326_s18, %s5895_s4 }
  0x28   :  { %p4332_p4 = pnand %p4330_p3, %p4327_p2 }
  0x2a   :  { %4335 = shalt.err (!%p4332_p4)
}
  0x2b   :  { %s4336_s25 = scalar_lea.vmem %s54_s15, 1024  ;;  %p4341_p6 = scmp.lt.s32.totalorder %s54_s15, %s54_s15 }
  0x2c   :  { %p4337_p5 = scmp.ne.s32.totalorder %s54_s15, %s4336_s25  ;;  %p4342_p7 = scmp.lt.s32.totalorder %s4336_s25, %s4336_s25 }
  0x2e   :  { %p4343_p8 = por %p4342_p7, %p4341_p6 }
  0x30   :  { %p4344_p9 = pnand %p4343_p8, %p4337_p5 }
  0x32   :  { %4347 = shalt.err (!%p4344_p9)
}
  0x33   :  { %59 = dma.hbm_to_vmem [thread:$0]  %s5895_s4, 1024, %s54_s15, [#allocation7], %s4402_s21, %s4402_s21, %s4403_s22  }
  0x34   :  { %4392 = dma.done.wait [#allocation4], 8192  }
  0x35   :  { %4393 = vsyncadd [#allocation4], 4294959104 }
  0x36   :  { %4394 = dma.done.wait [#allocation7], 2048  }
  0x37   :  { %4395 = vsyncadd [#allocation7], 4294965248  ;;  %v4405_v0 = vmov 0.0   ;;  %vm5901_vm0 = vmmov 0   ;;  %v4148_v1 = vld [vmem:[#allocation6] sm:$0xff]   ;;  %v4150_v3 = vld [vmem:[#allocation6 + $0x8] sm:$0xff]  }
  0x38   :  { %3956 = vmatprep.subr.bf16.mxu1 %v4405_v0  ;;  %3972 = vmatprep.mubr.msk.bf16.mxu1 %vm5901_vm0, %v4405_v0  ;;  %v4149_v2 = vld [vmem:[#allocation8] sm:$0xff]   ;;  %v4151_v4 = vld [vmem:[#allocation8 + $0x8] sm:$0xff]   ;;  %v4152_v5 = vld [vmem:[#allocation6 + $0x10] sm:$0xff]   ;;  %vm2451_vm1 = vcmask 130112   ;;  %vm2458_vm2 = vcmask 195712   ;;  %vm2465_vm3 = vcmask 261312  }
  0x39   :  { %3812 = vmatprep.subr.bf16.mxu0 %v4148_v1  ;;  %3957 = vmatpush3.bf16.msra.mxu1 %v4149_v2  ;;  %v4153_v6 = vld [vmem:[#allocation8 + $0x10] sm:$0xff]   ;;  %v4154_v7 = vld [vmem:[#allocation6 + $0x18] sm:$0xff]   ;;  %v4156_v9 = vld [vmem:[#allocation6 + $0x20] sm:$0xff]   ;;  %vm2472_vm4 = vcmask 326912   ;;  %vm2479_vm5 = vcmask 392512   ;;  %vm2486_vm6 = vcmask 458112  }
  0x3a   :  { %3813 = vmatpush3.bf16.msra.mxu0 %v4148_v1  ;;  %3958 = vmatprep.subr.bf16.mxu1 %v4405_v0  ;;  %v4155_v8 = vld [vmem:[#allocation8 + $0x18] sm:$0xff]   ;;  %v4157_v10 = vld [vmem:[#allocation8 + $0x20] sm:$0xff]   ;;  %v4158_v11 = vld [vmem:[#allocation6 + $0x28] sm:$0xff]   ;;  %vm2493_vm7 = vcmask 523712   ;;  %vm2500_vm8 = vcmask 589312   ;;  %vm2507_vm9 = vcmask 654912  }
  0x3b   :  { %3814 = vmatprep.subr.bf16.mxu0 %v4150_v3  ;;  %v4164_v12 = vld [vmem:[#allocation3] sm:$0xff]   ;;  %v4159_v13 = vld [vmem:[#allocation8 + $0x28] sm:$0xff]   ;;  %v4160_v14 = vld [vmem:[#allocation6 + $0x30] sm:$0xff]   ;;  %vm2514_vm10 = vcmask 720512   ;;  %vm2521_vm11 = vcmask 786112   ;;  %vm2528_vm12 = vcmask 851712  }
  0x3c   :  { %3828 = vmatprep.mubr.bf16.mxu0 %v4164_v12  ;;  %v4161_v15 = vld [vmem:[#allocation8 + $0x30] sm:$0xff]   ;;  %v4162_v16 = vld [vmem:[#allocation6 + $0x38] sm:$0xff]   ;;  %v1332_v18 = vld [vmem:[%s5892_s1] sm:$0xf]  ;;  %vm2535_vm13 = vcmask 917312   ;;  %vm2542_vm14 = vcmask 982912  }
  0x3d   :  { %3959 = vmatpush3.bf16.msra.mxu1 %v4151_v4  ;;  %v4163_v17 = vld [vmem:[#allocation8 + $0x38] sm:$0xff]   ;;  %v4165_v19 = vld [vmem:[#allocation3 + $0x8] sm:$0xff]   ;;  %v4166_v20 = vld [vmem:[#allocation3 + $0x10] sm:$0xff]   ;;  %vm2549_vm15 = vcmask 1048512  }
  0x3e   :  { %3815 = vmatpush3.bf16.msra.mxu0 %v4150_v3  ;;  %3960 = vmatprep.subr.bf16.mxu1 %v4405_v0  ;;  %v4167_v21 = vld [vmem:[#allocation3 + $0x18] sm:$0xff]   ;;  %v4168_v22 = vld [vmem:[#allocation3 + $0x20] sm:$0xff]   ;;  %v4169_v23 = vld [vmem:[#allocation3 + $0x28] sm:$0xff]  }
  0x3f   :  { %3816 = vmatprep.subr.bf16.mxu0 %v4152_v5  ;;  %v4170_v24 = vld [vmem:[#allocation3 + $0x30] sm:$0xff]   ;;  %v4171_v25 = vld [vmem:[#allocation3 + $0x38] sm:$0xff]   ;;  %v4172_v26 = vld [vmem:[#allocation3 + $0x40] sm:$0xff]  }
  0x40   :  { %v4173_v27 = vld [vmem:[#allocation3 + $0x48] sm:$0xff]   ;;  %v4174_v28 = vld [vmem:[#allocation3 + $0x50] sm:$0xff]   ;;  %v4175_v29 = vld [vmem:[#allocation3 + $0x58] sm:$0xff]  }
  0x41   :  { %3961 = vmatpush3.bf16.msra.mxu1 %v4153_v6  ;;  %v4176_v30 = vld [vmem:[#allocation3 + $0x60] sm:$0xff]   ;;  %v4177_v31 = vld [vmem:[#allocation3 + $0x68] sm:$0xff]   ;;  %v4178_v32 = vld [vmem:[#allocation3 + $0x70] sm:$0xff]  }
  0x42   :  { %3817 = vmatpush3.bf16.msra.mxu0 %v4152_v5  ;;  %3962 = vmatprep.subr.bf16.mxu1 %v4405_v0  ;;  %v4179_v33 = vld [vmem:[#allocation3 + $0x78] sm:$0xff]   ;;  %v4180_v34 = vld [vmem:[#allocation3 + $0x80] sm:$0xff]   ;;  %v4181_v35 = vld [vmem:[#allocation3 + $0x88] sm:$0xff]  }
  0x43   :  { %3818 = vmatprep.subr.bf16.mxu0 %v4154_v7  ;;  %v4182_v36 = vld [vmem:[#allocation3 + $0x90] sm:$0xff]   ;;  %v4183_v37 = vld [vmem:[#allocation3 + $0x98] sm:$0xff]   ;;  %v4184_v38 = vld [vmem:[#allocation3 + $0xa0] sm:$0xff]  }
  0x44   :  { %v4185_v39 = vld [vmem:[#allocation3 + $0xa8] sm:$0xff]   ;;  %v4186_v40 = vld [vmem:[#allocation3 + $0xb0] sm:$0xff]   ;;  %v4187_v41 = vld [vmem:[#allocation3 + $0xb8] sm:$0xff]  }
  0x45   :  { %3963 = vmatpush3.bf16.msra.mxu1 %v4155_v8  ;;  %v4188_v42 = vld [vmem:[#allocation3 + $0xc0] sm:$0xff]   ;;  %v4189_v43 = vld [vmem:[#allocation3 + $0xc8] sm:$0xff]   ;;  %v4190_v44 = vld [vmem:[#allocation3 + $0xd0] sm:$0xff]  }
  0x46   :  { %3819 = vmatpush3.bf16.msra.mxu0 %v4154_v7  ;;  %3964 = vmatprep.subr.bf16.mxu1 %v4405_v0  ;;  %v4539_v45 = vld [vmem:[#allocation3 + $0x1c0] sm:$0xff]   ;;  %v4191_v46 = vld [vmem:[#allocation3 + $0xd8] sm:$0xff]   ;;  %v4543_v48 = vld [vmem:[#allocation3 + $0x1c8] sm:$0xff]  }
  0x47   :  { %3820 = vmatprep.subr.bf16.mxu0 %v4156_v9  ;;  %v4192_v47 = vld [vmem:[#allocation3 + $0xe0] sm:$0xff]   ;;  %v4547_v49 = vld [vmem:[#allocation3 + $0x1d0] sm:$0xff]   ;;  %v4193_v50 = vld [vmem:[#allocation3 + $0xe8] sm:$0xff]  }
  0x48   :  { %v4194_v51 = vld [vmem:[#allocation3 + $0xf0] sm:$0xff]   ;;  %v4551_v52 = vld [vmem:[#allocation3 + $0x1d8] sm:$0xff]   ;;  %v4555_v53 = vld [vmem:[#allocation3 + $0x1e0] sm:$0xff]  }
  0x49   :  { %3965 = vmatpush3.bf16.msra.mxu1 %v4157_v10  ;;  %v4195_v54 = vld [vmem:[#allocation3 + $0xf8] sm:$0xff]   ;;  %v4196_v55 = vld [vmem:[#allocation3 + $0x100] sm:$0xff]   ;;  %v4559_v56 = vld [vmem:[#allocation3 + $0x1e8] sm:$0xff]  }
  0x4a   :  { %3821 = vmatpush3.bf16.msra.mxu0 %v4156_v9  ;;  %3966 = vmatprep.subr.bf16.mxu1 %v4405_v0  ;;  %v4563_v57 = vld [vmem:[#allocation3 + $0x1f0] sm:$0xff]   ;;  %v4197_v58 = vld [vmem:[#allocation3 + $0x108] sm:$0xff]   ;;  %v4567_v60 = vld [vmem:[#allocation3 + $0x1f8] sm:$0xff]  }
  0x4b   :  { %3822 = vmatprep.subr.bf16.mxu0 %v4158_v11  ;;  %v4198_v59 = vld [vmem:[#allocation3 + $0x110] sm:$0xff]   ;;  %v4199_v61 = vld [vmem:[#allocation3 + $0x118] sm:$0xff]   ;;  %v4200_v62 = vld [vmem:[#allocation3 + $0x120] sm:$0xff]  }
  0x4c   :  { %v4201_v63 = vld [vmem:[#allocation3 + $0x128] sm:$0xff]   ;;  %v4202_v1 = vld [vmem:[#allocation3 + $0x130] sm:$0xff]   ;;  %v4203_v2 = vld [vmem:[#allocation3 + $0x138] sm:$0xff]  }
  0x4d   :  { %3967 = vmatpush3.bf16.msra.mxu1 %v4159_v13  ;;  %v4204_v3 = vld [vmem:[#allocation3 + $0x140] sm:$0xff]   ;;  %v4205_v4 = vld [vmem:[#allocation3 + $0x148] sm:$0xff]   ;;  %v4206_v5 = vld [vmem:[#allocation3 + $0x150] sm:$0xff]  }
  0x4e   :  { %3823 = vmatpush3.bf16.msra.mxu0 %v4158_v11  ;;  %3968 = vmatprep.subr.bf16.mxu1 %v4405_v0  ;;  %v4207_v6 = vld [vmem:[#allocation3 + $0x158] sm:$0xff]   ;;  %v4208_v7 = vld [vmem:[#allocation3 + $0x160] sm:$0xff]   ;;  %v4209_v8 = vld [vmem:[#allocation3 + $0x168] sm:$0xff]  }
  0x4f   :  { %3824 = vmatprep.subr.bf16.mxu0 %v4160_v14  ;;  %v4210_v9 = vld [vmem:[#allocation3 + $0x170] sm:$0xff]   ;;  %v4211_v10 = vld [vmem:[#allocation3 + $0x178] sm:$0xff]   ;;  %v4212_v11 = vld [vmem:[#allocation3 + $0x180] sm:$0xff]  }
  0x50   :  { %v4214_v13 = vld [vmem:[#allocation3 + $0x190] sm:$0xff]  }
  0x51   :  { %3969 = vmatpush3.bf16.msra.mxu1 %v4161_v15  ;;  %v4216_v15 = vld [vmem:[#allocation3 + $0x1a0] sm:$0xff]  }
  0x52   :  { %3825 = vmatpush3.bf16.msra.mxu0 %v4160_v14  ;;  %3970 = vmatprep.subr.bf16.mxu1 %v4405_v0  ;;  %v4215_v14 = vld [vmem:[#allocation3 + $0x198] sm:$0xff]  }
  0x53   :  { %3826 = vmatprep.subr.bf16.mxu0 %v4162_v16 }
  0x55   :  { %3971 = vmatpush3.bf16.msra.mxu1 %v4163_v17 }
  0x56   :  { %3827 = vmatpush3.bf16.msra.mxu0 %v4162_v16  ;;  %3976 = vmatprep.subr.bf16.mxu1 %v4405_v0  ;;  %v4407_v16 = vmov 1966171168  }
  0x57   :  { %4116 = vmatprep.subr.bf16.mxu0 %v4405_v0  ;;  %v1447_v17 = vunpack.c.l.s4 %v4407_v16 }
  0x58   :  { %3973 = vmatmul.mubr.bf16.vlgmr.msra.gmra.mrb[0].mxu1 %v1332_v18  ;;  %v1449_v18 = vlaneseq }
  0x59   :  { %3829 = vmatmul.mubr.bf16.vlgmr.msra.gmra.mrb[0].mxu0 %v4165_v19  ;;  %3977 = vmatpush3.bf16.msra.mxu1 %v4164_v12  ;;  %v4213_v12 = vld [vmem:[#allocation3 + $0x188] sm:$0xff]  }
  0x5a   :  { %3832 = vmatprep.mubr.bf16.mxu0 %v4166_v20  ;;  %3978 = vmatprep.subr.bf16.mxu1 %v4405_v0 }
  0x5b   :  { %3992 = vmatprep.mubr.msk.bf16.mxu1 %vm5901_vm0, %v4405_v0  ;;  %4117 = vmatpush3.bf16.msra.mxu0 %v4539_v45 }
  0x5c   :  { %4118 = vmatprep.subr.bf16.mxu0 %v4405_v0 }
  0x5d   :  { %3979 = vmatpush3.bf16.msra.mxu1 %v4165_v19  ;;  %v4217_v19 = vld [vmem:[#allocation3 + $0x1a8] sm:$0xff]  }
  0x5e   :  { %3980 = vmatprep.subr.bf16.mxu1 %v4405_v0 }
  0x5f   :  { %4119 = vmatpush3.bf16.msra.mxu0 %v4543_v48 }
  0x60   :  { %4120 = vmatprep.subr.bf16.mxu0 %v4405_v0 }
  0x61   :  { %3833 = vmatmul.mubr.bf16.gmra.mrb[4].mxu0 %v4167_v21  ;;  %3981 = vmatpush3.bf16.msra.mxu1 %v4166_v20  ;;  %v4218_v20 = vld [vmem:[#allocation3 + $0x1b0] sm:$0xff]  }
  0x62   :  { %3836 = vmatprep.mubr.bf16.mxu0 %v4168_v22  ;;  %3982 = vmatprep.subr.bf16.mxu1 %v4405_v0 }
  0x63   :  { %4121 = vmatpush3.bf16.msra.mxu0 %v4547_v49 }
  0x64   :  { %4122 = vmatprep.subr.bf16.mxu0 %v4405_v0 }
  0x65   :  { %3983 = vmatpush3.bf16.msra.mxu1 %v4167_v21  ;;  %v1448_v21 = vunpack.c.0.s8 %v1447_v17 }
  0x66   :  { %3984 = vmatprep.subr.bf16.mxu1 %v4405_v0 }
  0x67   :  { %4123 = vmatpush3.bf16.msra.mxu0 %v4551_v52 }
  0x68   :  { %4124 = vmatprep.subr.bf16.mxu0 %v4405_v0 }
  0x69   :  { %3837 = vmatmul.mubr.bf16.gmra.mrb[8].mxu0 %v4169_v23  ;;  %3985 = vmatpush3.bf16.msra.mxu1 %v4168_v22  ;;  %v4571_v22 = vshrl.u32 %v1449_v18, 7 }
  0x6a   :  { %3840 = vmatprep.mubr.bf16.mxu0 %v4170_v24  ;;  %3986 = vmatprep.subr.bf16.mxu1 %v4405_v0 }
  0x6b   :  { %4125 = vmatpush3.bf16.msra.mxu0 %v4555_v53 }
  0x6c   :  { %4126 = vmatprep.subr.bf16.mxu0 %v4405_v0 }
  0x6d   :  { %3987 = vmatpush3.bf16.msra.mxu1 %v4169_v23  ;;  %v3645_v23 = vld [vmem:[%s5896_s5] ss:$0 sm:$0xff] }
  0x6e   :  { %3988 = vmatprep.subr.bf16.mxu1 %v4405_v0 }
  0x6f   :  { %4127 = vmatpush3.bf16.msra.mxu0 %v4559_v56 }
  0x70   :  { %4128 = vmatprep.subr.bf16.mxu0 %v4405_v0 }
  0x71   :  { %3841 = vmatmul.mubr.bf16.gmra.mrb[12].mxu0 %v4171_v25  ;;  %3989 = vmatpush3.bf16.msra.mxu1 %v4170_v24  ;;  %v4577_v24 = vsub.s32 %v1448_v21, %v4571_v22 }
  0x72   :  { %3844 = vmatprep.mubr.bf16.mxu0 %v4172_v26  ;;  %3990 = vmatprep.subr.bf16.mxu1 %v4405_v0 }
  0x73   :  { %4129 = vmatpush3.bf16.msra.mxu0 %v4563_v57 }
  0x74   :  { %4130 = vmatprep.subr.bf16.mxu0 %v4405_v0 }
  0x75   :  { %3991 = vmatpush3.bf16.msra.mxu1 %v4171_v25 }
  0x76   :  { %3996 = vmatprep.subr.bf16.mxu1 %v4405_v0 }
  0x77   :  { %4131 = vmatpush3.bf16.msra.mxu0 %v4567_v60 }
  0x79   :  { %3845 = vmatmul.mubr.bf16.gmra.mrb[16].mxu0 %v4173_v27 }
  0x7a   :  { %3848 = vmatprep.mubr.bf16.mxu0 %v4174_v28 }
  0x81   :  { %3849 = vmatmul.mubr.bf16.gmra.mrb[20].mxu0 %v4175_v29  ;;  %v4219_v29 = vld [vmem:[#allocation3 + $0x1b8] sm:$0xff]  }
  0x82   :  { %3852 = vmatprep.mubr.bf16.mxu0 %v4176_v30 }
  0x89   :  { %3853 = vmatmul.mubr.bf16.gmra.mrb[24].mxu0 %v4177_v31 }
  0x8a   :  { %3856 = vmatprep.mubr.bf16.mxu0 %v4178_v32 }
  0x91   :  { %3857 = vmatmul.mubr.bf16.gmra.mrb[28].mxu0 %v4179_v33 }
  0x92   :  { %3860 = vmatprep.mubr.bf16.mxu0 %v4180_v34 }
  0x99   :  { %3861 = vmatmul.mubr.bf16.gmra.mrb[32].mxu0 %v4181_v35 }
  0x9a   :  { %3864 = vmatprep.mubr.bf16.mxu0 %v4182_v36  ;;  %v4586_v36 = vsub.s32 0, %v4571_v22 }
  0xa1   :  { %3865 = vmatmul.mubr.bf16.gmra.mrb[36].mxu0 %v4183_v37 }
  0xa2   :  { %3868 = vmatprep.mubr.bf16.mxu0 %v4184_v38  ;;  %v4595_v38 = vld [vmem:[%s5894_s3] ss:$0 sm:$0xff] }
  0xa9   :  { %3869 = vmatmul.mubr.bf16.gmra.mrb[40].mxu0 %v4185_v39 }
  0xaa   :  { %3872 = vmatprep.mubr.bf16.mxu0 %v4186_v40 }
  0xb1   :  { %3873 = vmatmul.mubr.bf16.gmra.mrb[44].mxu0 %v4187_v41 }
  0xb2   :  { %3876 = vmatprep.mubr.bf16.mxu0 %v4188_v42 }
  0xb9   :  { %3877 = vmatmul.mubr.bf16.gmra.mrb[48].mxu0 %v4189_v43 }
  0xba   :  { %3880 = vmatprep.mubr.bf16.mxu0 %v4190_v44 }
  0xc1   :  { %3881 = vmatmul.mubr.bf16.gmra.mrb[52].mxu0 %v4191_v46 }
  0xc2   :  { %3884 = vmatprep.mubr.bf16.mxu0 %v4192_v47 }
  0xc9   :  { %3885 = vmatmul.mubr.bf16.gmra.mrb[56].mxu0 %v4193_v50 }
  0xca   :  { %3888 = vmatprep.mubr.bf16.mxu0 %v4194_v51 }
  0xd1   :  { %3889 = vmatmul.mubr.bf16.gmra.mrb[60].mxu0 %v4195_v54 }
  0xd2   :  { %3892 = vmatprep.mubr.bf16.mxu0 %v4196_v55 }
  0xd9   :  { %3893 = vmatmul.mubr.bf16.gmra.mrb[64].mxu0 %v4197_v58 }
  0xda   :  { %3896 = vmatprep.mubr.bf16.mxu0 %v4198_v59 }
  0xe1   :  { %3897 = vmatmul.mubr.bf16.gmra.mrb[68].mxu0 %v4199_v61 }
  0xe2   :  { %3900 = vmatprep.mubr.bf16.mxu0 %v4200_v62 }
  0xe9   :  { %3901 = vmatmul.mubr.bf16.gmra.mrb[72].mxu0 %v4201_v63 }
  0xea   :  { %3904 = vmatprep.mubr.bf16.mxu0 %v4202_v1 }
  0xf1   :  { %3905 = vmatmul.mubr.bf16.gmra.mrb[76].mxu0 %v4203_v2 }
  0xf2   :  { %3908 = vmatprep.mubr.bf16.mxu0 %v4204_v3  ;;  %v4628_v3 = vld [vmem:[%s5897_s6] ss:$0 sm:$0xff] }
  0xf9   :  { %3909 = vmatmul.mubr.bf16.gmra.mrb[80].mxu0 %v4205_v4 }
  0xfa   :  { %3912 = vmatprep.mubr.bf16.mxu0 %v4206_v5 }
 0x101   :  { %3913 = vmatmul.mubr.bf16.gmra.mrb[84].mxu0 %v4207_v6 }
 0x102   :  { %3916 = vmatprep.mubr.bf16.mxu0 %v4208_v7 }
 0x109   :  { %3917 = vmatmul.mubr.bf16.gmra.mrb[88].mxu0 %v4209_v8 }
 0x10a   :  { %3920 = vmatprep.mubr.bf16.mxu0 %v4210_v9 }
 0x111   :  { %3921 = vmatmul.mubr.bf16.gmra.mrb[92].mxu0 %v4211_v10 }
 0x112   :  { %3924 = vmatprep.mubr.bf16.mxu0 %v4212_v11 }
 0x119   :  { %3925 = vmatmul.mubr.bf16.gmra.mrb[96].mxu0 %v4213_v12 }
 0x11a   :  { %3928 = vmatprep.mubr.bf16.mxu0 %v4214_v13 }
 0x121   :  { %3929 = vmatmul.mubr.bf16.gmra.mrb[100].mxu0 %v4215_v14 }
 0x122   :  { %3932 = vmatprep.mubr.bf16.mxu0 %v4216_v15 }
 0x129   :  { %3933 = vmatmul.mubr.bf16.gmra.mrb[104].mxu0 %v4217_v19 }
 0x12a   :  { %3936 = vmatprep.mubr.bf16.mxu0 %v4218_v20 }
 0x12b   :  { %v1438_v25 = vpop.f32.mrb[0].mxu1 }
 0x12c   :  { %v3830_v26 = vpop.f32.mrb[0].mxu0  ;;  %v4579_v27 = vadd.f32 %v3645_v23, %v1438_v25  ;;  %v3974_v30 = vpop.f32.mrb[1].mxu1 }
 0x12d   :  { %v686_v28 = vpop.f32.mrb[1].mxu0  ;;  %v1441_v32 = vpop.f32.mrb[2].mxu1  ;;  %v1206_v40 = vadd.f32 %v3830_v26, %v4595_v38 }
 0x12e   :  { %v3831_v31 = vpop.f32.mrb[2].mxu0  ;;  %v4583_v33 = vrot.slane %v4579_v27, %v4577_v24  ;;  %v3975_v35 = vpop.f32.mrb[3].mxu1 }
 0x12f   :  { %v689_v34 = vpop.f32.mrb[3].mxu0  ;;  %v1207_v41 = vadd.f32 %v3831_v31, %v4595_v38 }
 0x130   :  { %v4590_v37 = vrot.slane %v4583_v33, %v4577_v24  ;;  %v1205_v47 = vadd.f32 %v4595_v38, %v689_v34  ;;  %v1460_v30 = vcombine.high %v4583_v33, %v4583_v33 }
 0x131   :  { %3937 = vmatmul.mubr.bf16.gmra.mrb[108].mxu0 %v4219_v29 }
 0x132   :  { %3940 = vmatprep.mubr.bf16.mxu0 %v4539_v45  ;;  %v4600_v39 = vrot.slane %v4590_v37, %v4586_v36  ;;  %v1204_v45 = vadd.f32 %v4595_v38, %v686_v28 }
 0x134   :  { %v3834_v42 = vpop.f32.mrb[4].mxu0  ;;  %v1536_v44 = vadd.f32 %v4600_v39, %v1206_v40  ;;  %v4606_v46 = vadd.f32 %v4600_v39, %v1207_v41  ;;  %v1535_v54 = vadd.f32 %v4600_v39, %v1205_v47  ;;  %v1534_v63 = vadd.f32 %v4600_v39, %v1204_v45 }
 0x135   :  { %v702_v43 = vpop.f32.mrb[5].mxu0  ;;  %v1210_v55 = vadd.f32 %v3834_v42, %v4595_v38 }
 0x136   :  { %v3835_v50 = vpop.f32.mrb[6].mxu0  ;;  %v1208_v58 = vadd.f32 %v4595_v38, %v702_v43  ;;  %v1663_v9 = vmax.f32 %v1535_v54, 0.0  ;;  %v1664_v23 = vmax.f32 %v1536_v44, 0.0  ;;  %v1665_v34 = vmax.f32 %v4606_v46, 0.0 }
 0x137   :  { %v705_v51 = vpop.f32.mrb[7].mxu0  ;;  %v1211_v59 = vadd.f32 %v3835_v50, %v4595_v38  ;;  %v4617_v62 = vadd.f32 %v4600_v39, %v1210_v55  ;;  %v4657_v50 = vrot.slane %v1460_v30, %v4577_v24 }
 0x138   :  { %v1209_v61 = vadd.f32 %v4595_v38, %v705_v51  ;;  %v1538_v4 = vadd.f32 %v4600_v39, %v1208_v58  ;;  %v1798_v25 = vmul.f32 %v4628_v3, %v1663_v9  ;;  %v1799_v35 = vmul.f32 %v4628_v3, %v1664_v23 }
 0x139   :  { %3941 = vmatmul.mubr.bf16.gmra.mrb[112].mxu0 %v4543_v48  ;;  %v4622_v1 = vadd.f32 %v4600_v39, %v1211_v59  ;;  %v1662_v48 = vmax.f32 %v1534_v63, 0.0  ;;  %v1668_v51 = vmax.f32 %v4617_v62, 0.0  ;;  %v1800_v45 = vmul.f32 %v4628_v3, %v1665_v34 }
 0x13a   :  { %3944 = vmatprep.mubr.bf16.mxu0 %v4547_v49  ;;  %v1539_v2 = vadd.f32 %v4600_v39, %v1209_v61  ;;  %v1666_v8 = vmax.f32 %v1538_v4, 0.0  ;;  %v4672_v61 = vrot.slane %v4657_v50, %v4586_v36 }
 0x13b   :  { %v1797_v49 = vmul.f32 %v4628_v3, %v1662_v48  ;;  %v1669_v63 = vmax.f32 %v4622_v1, 0.0 }
 0x13c   :  { %v3838_v5 = vpop.f32.mrb[8].mxu0  ;;  %v1667_v12 = vmax.f32 %v1539_v2, 0.0  ;;  %v1801_v14 = vmul.f32 %v4628_v3, %v1666_v8 }
 0x13d   :  { %v1214_v6 = vadd.f32 %v3838_v5, %v4595_v38  ;;  %v718_v7 = vpop.f32.mrb[9].mxu0  ;;  %1925 = vadd.xlane.f32.xlu0 %v1797_v49  ;;  %v1804_v49 = vmul.f32 %v4628_v3, %v1669_v63 }
 0x13e   :  { %v1212_v10 = vadd.f32 %v4595_v38, %v718_v7  ;;  %v3839_v11 = vpop.f32.mrb[10].mxu0  ;;  %1933 = vadd.xlane.f32.xlu1 %v1801_v14  ;;  %v1802_v28 = vmul.f32 %v4628_v3, %v1667_v12 }
 0x13f   :  { %v1544_v13 = vadd.f32 %v4600_v39, %v1214_v6  ;;  %v1215_v15 = vadd.f32 %v3839_v11, %v4595_v38  ;;  %v721_v16 = vpop.f32.mrb[11].mxu0 }
 0x140   :  { %v1542_v17 = vadd.f32 %v4600_v39, %v1212_v10  ;;  %v1213_v19 = vadd.f32 %v4595_v38, %v721_v16 }
 0x141   :  { %v1672_v20 = vmax.f32 %v1544_v13, 0.0  ;;  %v1545_v21 = vadd.f32 %v4600_v39, %v1215_v15  ;;  %3945 = vmatmul.mubr.bf16.gmra.mrb[116].mxu0 %v4551_v52  ;;  %1927 = vadd.xlane.f32.xlu0 %v1798_v25 }
 0x142   :  { %v1543_v26 = vadd.f32 %v4600_v39, %v1213_v19  ;;  %3948 = vmatprep.mubr.bf16.mxu0 %v4555_v53  ;;  %1935 = vadd.xlane.f32.xlu1 %v1802_v28  ;;  %v1670_v41 = vmax.f32 %v1542_v17, 0.0 }
 0x143   :  { %v1807_v52 = vmul.f32 %v4628_v3, %v1672_v20  ;;  %v1673_v55 = vmax.f32 %v1545_v21, 0.0 }
 0x144   :  { %v3842_v29 = vpop.f32.mrb[12].mxu0  ;;  %v1805_v58 = vmul.f32 %v4628_v3, %v1670_v41  ;;  %v1671_v4 = vmax.f32 %v1543_v26, 0.0 }
 0x145   :  { %v1218_v31 = vadd.f32 %v3842_v29, %v4595_v38  ;;  %v734_v32 = vpop.f32.mrb[13].mxu0  ;;  %1929 = vadd.xlane.f32.xlu0 %v1799_v35  ;;  %v1808_v5 = vmul.f32 %v4628_v3, %v1673_v55 }
 0x146   :  { %v1216_v40 = vadd.f32 %v4595_v38, %v734_v32  ;;  %v3843_v53 = vpop.f32.mrb[14].mxu0  ;;  %1945 = vadd.xlane.f32.xlu1 %v1807_v52  ;;  %v1806_v12 = vmul.f32 %v4628_v3, %v1671_v4 }
 0x147   :  { %v1548_v42 = vadd.f32 %v4600_v39, %v1218_v31  ;;  %v1219_v43 = vadd.f32 %v3843_v53, %v4595_v38  ;;  %v737_v44 = vpop.f32.mrb[15].mxu0 }
 0x148   :  { %v1546_v33 = vadd.f32 %v4600_v39, %v1216_v40  ;;  %v1217_v47 = vadd.f32 %v4595_v38, %v737_v44 }
 0x149   :  { %v4660_v46 = vadd.f32 %v4600_v39, %v1219_v43  ;;  %3949 = vmatmul.mubr.bf16.gmra.mrb[120].mxu0 %v4559_v56  ;;  %1931 = vadd.xlane.f32.xlu0 %v1800_v45  ;;  %v1676_v11 = vmax.f32 %v1548_v42, 0.0 }
 0x14a   :  { %v4666_v54 = vadd.f32 %v4600_v39, %v1217_v47  ;;  %3952 = vmatprep.mubr.bf16.mxu0 %v4563_v57  ;;  %1941 = vadd.xlane.f32.xlu1 %v1805_v58  ;;  %v1803_v39 = vmul.f32 %v4628_v3, %v1668_v51  ;;  %v1674_v17 = vmax.f32 %v1546_v33, 0.0 }
 0x14b   :  { %v1811_v20 = vmul.f32 %v4628_v3, %v1676_v11  ;;  %v1677_v31 = vmax.f32 %v4660_v46, 0.0 }
 0x14c   :  { %v3846_v59 = vpop.f32.mrb[16].mxu0  ;;  %v1809_v32 = vmul.f32 %v4628_v3, %v1674_v17  ;;  %v1675_v43 = vmax.f32 %v4666_v54, 0.0 }
 0x14d   :  { %v1222_v56 = vadd.f32 %v3846_v59, %v4595_v38  ;;  %v750_v62 = vpop.f32.mrb[17].mxu0  ;;  %1937 = vadd.xlane.f32.xlu0 %v1803_v39  ;;  %v1812_v33 = vmul.f32 %v4628_v3, %v1677_v31 }
 0x14e   :  { %v1220_v2 = vadd.f32 %v4595_v38, %v750_v62  ;;  %v3847_v57 = vpop.f32.mrb[18].mxu0  ;;  %1947 = vadd.xlane.f32.xlu1 %v1808_v5  ;;  %v1810_v62 = vmul.f32 %v4628_v3, %v1675_v43 }
 0x14f   :  { %v4679_v48 = vadd.f32 %v4672_v61, %v1222_v56  ;;  %v1223_v6 = vadd.f32 %v3847_v57, %v4595_v38  ;;  %v753_v7 = vpop.f32.mrb[19].mxu0 }
 0x150   :  { %v4684_v8 = vadd.f32 %v4672_v61, %v1220_v2  ;;  %v1221_v1 = vadd.f32 %v4595_v38, %v753_v7 }
 0x151   :  { %v4688_v9 = vadd.f32 %v4672_v61, %v1223_v6  ;;  %3953 = vmatmul.mubr.bf16.gmra.mrb[124].mxu0 %v4567_v60  ;;  %1939 = vadd.xlane.f32.xlu0 %v1804_v49  ;;  %v1680_v54 = vmax.f32 %v4679_v48, 0.0 }
 0x152   :  { %v4693_v10 = vadd.f32 %v4672_v61, %v1221_v1  ;;  %4132 = vmatprep.mubr.msk.bf16.mxu0 %vm5901_vm0, %v4405_v0  ;;  %1943 = vadd.xlane.f32.xlu1 %v1806_v12  ;;  %v1678_v7 = vmax.f32 %v4684_v8, 0.0  ;;  %vm3104_vm0 = vcmask 1041409  }
 0x153   :  { %v1815_v48 = vmul.f32 %v4628_v3, %v1680_v54  ;;  %v1681_v17 = vmax.f32 %v4688_v9, 0.0 }
 0x154   :  { %v3850_v13 = vpop.f32.mrb[20].mxu0  ;;  %v1679_v31 = vmax.f32 %v4693_v10, 0.0 }
 0x155   :  { %v1226_v14 = vadd.f32 %v3850_v13, %v4595_v38  ;;  %v766_v15 = vpop.f32.mrb[21].mxu0 }
 0x156   :  { %v1224_v16 = vadd.f32 %v4595_v38, %v766_v15  ;;  %v3851_v60 = vpop.f32.mrb[22].mxu0  ;;  %1953 = vadd.xlane.f32.xlu1 %v1811_v20  ;;  %v1813_v20 = vmul.f32 %v4628_v3, %v1678_v7 }
 0x157   :  { %v4701_v19 = vadd.f32 %v4672_v61, %v1226_v14  ;;  %v1227_v21 = vadd.f32 %v3851_v60, %v4595_v38  ;;  %v769_v23 = vpop.f32.mrb[23].mxu0 }
 0x158   :  { %v1554_v25 = vadd.f32 %v4672_v61, %v1224_v16  ;;  %v1225_v26 = vadd.f32 %v4595_v38, %v769_v23  ;;  %v1490_v16 = vcombine.high %v4590_v37, %v4590_v37 }
 0x159   :  { %v4708_v28 = vadd.f32 %v4672_v61, %v1227_v21  ;;  %v1684_v43 = vmax.f32 %v4701_v19, 0.0 }
 0x15a   :  { %v1682_v29 = vmax.f32 %v1554_v25, 0.0  ;;  %v1555_v30 = vadd.f32 %v4672_v61, %v1225_v26  ;;  %1949 = vadd.xlane.f32.xlu1 %v1809_v32  ;;  %v4747_v26 = vrot.slane %v1490_v16, %v4586_v36  ;;  %v1816_v32 = vmul.f32 %v4628_v3, %v1681_v17 }
 0x15b   :  { %v1819_v19 = vmul.f32 %v4628_v3, %v1684_v43 }
 0x15c   :  { %v1683_v52 = vmax.f32 %v1555_v30, 0.0  ;;  %v3854_v34 = vpop.f32.mrb[24].mxu0  ;;  %v1817_v35 = vmul.f32 %v4628_v3, %v1682_v29 }
 0x15d   :  { %v1230_v40 = vadd.f32 %v3854_v34, %v4595_v38  ;;  %v782_v53 = vpop.f32.mrb[25].mxu0 }
 0x15e   :  { %v1228_v41 = vadd.f32 %v4595_v38, %v782_v53  ;;  %1965 = vadd.xlane.f32.xlu0 %v1817_v35  ;;  %v3855_v42 = vpop.f32.mrb[26].mxu0  ;;  %v1818_v55 = vmul.f32 %v4628_v3, %v1683_v52  ;;  %1955 = vadd.xlane.f32.xlu1 %v1812_v33 }
 0x15f   :  { %v1560_v44 = vadd.f32 %v4672_v61, %v1230_v40  ;;  %v1231_v47 = vadd.f32 %v3855_v42, %v4595_v38  ;;  %v785_v46 = vpop.f32.mrb[27].mxu0 }
 0x160   :  { %v1558_v51 = vadd.f32 %v4672_v61, %v1228_v41  ;;  %v1229_v45 = vadd.f32 %v4595_v38, %v785_v46 }
 0x161   :  { %v1688_v58 = vmax.f32 %v1560_v44, 0.0  ;;  %v1561_v59 = vadd.f32 %v4672_v61, %v1231_v47  ;;  %v1814_v44 = vmul.f32 %v4628_v3, %v1679_v31 }
 0x162   :  { %v1559_v56 = vadd.f32 %v4672_v61, %v1229_v45  ;;  %1967 = vadd.xlane.f32.xlu0 %v1818_v55  ;;  %v1686_v39 = vmax.f32 %v1558_v51, 0.0  ;;  %1951 = vadd.xlane.f32.xlu1 %v1810_v62 }
 0x163   :  { %v1823_v63 = vmul.f32 %v4628_v3, %v1688_v58  ;;  %v1689_v12 = vmax.f32 %v1561_v59, 0.0  ;;  %v1685_v59 = vmax.f32 %v4708_v28, 0.0 }
 0x164   :  { %v3858_v2 = vpop.f32.mrb[28].mxu0  ;;  %v1821_v15 = vmul.f32 %v4628_v3, %v1686_v39  ;;  %v1687_v21 = vmax.f32 %v1559_v56, 0.0 }
 0x165   :  { %v1234_v57 = vadd.f32 %v3858_v2, %v4595_v38  ;;  %v798_v4 = vpop.f32.mrb[29].mxu0  ;;  %v1824_v25 = vmul.f32 %v4628_v3, %v1689_v12 }
 0x166   :  { %v1232_v5 = vadd.f32 %v4595_v38, %v798_v4  ;;  %1977 = vadd.xlane.f32.xlu0 %v1823_v63  ;;  %v3859_v6 = vpop.f32.mrb[30].mxu0  ;;  %1961 = vadd.xlane.f32.xlu1 %v1815_v48  ;;  %v1822_v41 = vmul.f32 %v4628_v3, %v1687_v21 }
 0x167   :  { %v1564_v1 = vadd.f32 %v4672_v61, %v1234_v57  ;;  %v1235_v49 = vadd.f32 %v3859_v6, %v4595_v38  ;;  %v801_v11 = vpop.f32.mrb[31].mxu0  ;;  %v1820_v6 = vmul.f32 %v4628_v3, %v1685_v59 }
 0x168   :  { %v1562_v13 = vadd.f32 %v4672_v61, %v1232_v5  ;;  %v1233_v14 = vadd.f32 %v4595_v38, %v801_v11 }
 0x169   :  { %v1565_v8 = vadd.f32 %v4672_v61, %v1235_v49  ;;  %v1692_v35 = vmax.f32 %v1564_v1, 0.0 }
 0x16a   :  { %v4741_v60 = vadd.f32 %v4672_v61, %v1233_v14  ;;  %1973 = vadd.xlane.f32.xlu0 %v1821_v15  ;;  %1957 = vadd.xlane.f32.xlu1 %v1813_v20  ;;  %v1690_v33 = vmax.f32 %v1562_v13, 0.0 }
 0x16b   :  { %v1827_v46 = vmul.f32 %v4628_v3, %v1692_v35  ;;  %v1693_v63 = vmax.f32 %v1565_v8, 0.0 }
 0x16c   :  { %v3862_v23 = vpop.f32.mrb[32].mxu0  ;;  %v1825_v57 = vmul.f32 %v4628_v3, %v1690_v33  ;;  %v1691_v7 = vmax.f32 %v4741_v60, 0.0 }
 0x16d   :  { %v1238_v37 = vadd.f32 %v3862_v23, %v4595_v38  ;;  %v814_v29 = vpop.f32.mrb[33].mxu0  ;;  %v1828_v48 = vmul.f32 %v4628_v3, %v1693_v63 }
 0x16e   :  { %v1236_v30 = vadd.f32 %v4595_v38, %v814_v29  ;;  %1979 = vadd.xlane.f32.xlu0 %v1824_v25  ;;  %v3863_v61 = vpop.f32.mrb[34].mxu0  ;;  %1963 = vadd.xlane.f32.xlu1 %v1816_v32  ;;  %v1826_v23 = vmul.f32 %v4628_v3, %v1691_v7 }
 0x16f   :  { %v4753_v9 = vadd.f32 %v4747_v26, %v1238_v37  ;;  %v1239_v52 = vadd.f32 %v3863_v61, %v4595_v38  ;;  %v817_v34 = vpop.f32.mrb[35].mxu0 }
 0x170   :  { %v4758_v40 = vadd.f32 %v4747_v26, %v1236_v30  ;;  %v1237_v53 = vadd.f32 %v4595_v38, %v817_v34 }
 0x171   :  { %v1569_v42 = vadd.f32 %v4747_v26, %v1239_v52  ;;  %v1696_v60 = vmax.f32 %v4753_v9, 0.0 }
 0x172   :  { %v1567_v10 = vadd.f32 %v4747_v26, %v1237_v53  ;;  %1975 = vadd.xlane.f32.xlu0 %v1822_v41  ;;  %1959 = vadd.xlane.f32.xlu1 %v1814_v44  ;;  %v1694_v61 = vmax.f32 %v4758_v40, 0.0 }
 0x173   :  { %v1697_v5 = vmax.f32 %v1569_v42, 0.0  ;;  %v1831_v9 = vmul.f32 %v4628_v3, %v1696_v60 }
 0x174   :  { %v3866_v47 = vpop.f32.mrb[36].mxu0  ;;  %v1695_v14 = vmax.f32 %v1567_v10, 0.0 }
 0x175   :  { %v1242_v51 = vadd.f32 %v3866_v47, %v4595_v38  ;;  %v830_v45 = vpop.f32.mrb[37].mxu0  ;;  %v1832_v16 = vmul.f32 %v4628_v3, %v1697_v5  ;;  %v1829_v47 = vmul.f32 %v4628_v3, %v1694_v61 }
 0x176   :  { %v1240_v55 = vadd.f32 %v4595_v38, %v830_v45  ;;  %1985 = vadd.xlane.f32.xlu0 %v1827_v46  ;;  %v3867_v58 = vpop.f32.mrb[38].mxu0  ;;  %1969 = vadd.xlane.f32.xlu1 %v1819_v19  ;;  %v1830_v30 = vmul.f32 %v4628_v3, %v1695_v14  ;;  %v1492_v46 = vcombine.high %v4657_v50, %v4657_v50 }
 0x177   :  { %v4771_v56 = vadd.f32 %v4747_v26, %v1242_v51  ;;  %v1243_v54 = vadd.f32 %v3867_v58, %v4595_v38  ;;  %v833_v62 = vpop.f32.mrb[39].mxu0 }
 0x178   :  { %v1570_v39 = vadd.f32 %v4747_v26, %v1240_v55  ;;  %v1241_v2 = vadd.f32 %v4595_v38, %v833_v62 }
 0x179   :  { %v1573_v4 = vadd.f32 %v4747_v26, %v1243_v54  ;;  %v1700_v43 = vmax.f32 %v4771_v56, 0.0  ;;  %v4828_v54 = vrot.slane %v1492_v46, %v4586_v36 }
 0x17a   :  { %v4780_v28 = vadd.f32 %v4747_v26, %v1241_v2  ;;  %1981 = vadd.xlane.f32.xlu0 %v1825_v57  ;;  %1971 = vadd.xlane.f32.xlu1 %v1820_v6  ;;  %v1698_v29 = vmax.f32 %v1570_v39, 0.0 }
 0x17b   :  { %v1701_v53 = vmax.f32 %v1573_v4, 0.0  ;;  %v1835_v19 = vmul.f32 %v4628_v3, %v1700_v43 }
 0x17c   :  { %v3870_v1 = vpop.f32.mrb[40].mxu0  ;;  %v1833_v42 = vmul.f32 %v4628_v3, %v1698_v29  ;;  %v1699_v59 = vmax.f32 %v4780_v28, 0.0 }
 0x17d   :  { %v1246_v49 = vadd.f32 %v3870_v1, %v4595_v38  ;;  %v846_v11 = vpop.f32.mrb[41].mxu0  ;;  %v1836_v58 = vmul.f32 %v4628_v3, %v1701_v53 }
 0x17e   :  { %v1244_v12 = vadd.f32 %v4595_v38, %v846_v11  ;;  %1987 = vadd.xlane.f32.xlu0 %v1828_v48  ;;  %v3871_v13 = vpop.f32.mrb[42].mxu0  ;;  %1995 = vadd.xlane.f32.xlu1 %v1832_v16  ;;  %v1834_v7 = vmul.f32 %v4628_v3, %v1699_v59 }
 0x17f   :  { %v1576_v15 = vadd.f32 %v4747_v26, %v1246_v49  ;;  %v1247_v8 = vadd.f32 %v3871_v13, %v4595_v38  ;;  %v849_v17 = vpop.f32.mrb[43].mxu0 }
 0x180   :  { %v1574_v20 = vadd.f32 %v4747_v26, %v1244_v12  ;;  %v1245_v21 = vadd.f32 %v4595_v38, %v849_v17 }
 0x181   :  { %v4795_v25 = vadd.f32 %v4747_v26, %v1247_v8  ;;  %v1704_v55 = vmax.f32 %v1576_v15, 0.0 }
 0x182   :  { %v4798_v37 = vadd.f32 %v4747_v26, %v1245_v21  ;;  %1983 = vadd.xlane.f32.xlu0 %v1826_v23  ;;  %1991 = vadd.xlane.f32.xlu1 %v1830_v30  ;;  %v1702_v39 = vmax.f32 %v1574_v20, 0.0 }
 0x183   :  { %v1839_v57 = vmul.f32 %v4628_v3, %v1704_v55  ;;  %v1705_v11 = vmax.f32 %v4795_v25, 0.0 }
 0x184   :  { %v3874_v31 = vpop.f32.mrb[44].mxu0  ;;  %v1837_v12 = vmul.f32 %v4628_v3, %v1702_v39  ;;  %v1703_v20 = vmax.f32 %v4798_v37, 0.0 }
 0x185   :  { %v1250_v32 = vadd.f32 %v3874_v31, %v4595_v38  ;;  %v862_v52 = vpop.f32.mrb[45].mxu0  ;;  %v1840_v23 = vmul.f32 %v4628_v3, %v1705_v11 }
 0x186   :  { %v1248_v34 = vadd.f32 %v4595_v38, %v862_v52  ;;  %1993 = vadd.xlane.f32.xlu0 %v1831_v9  ;;  %v3875_v35 = vpop.f32.mrb[46].mxu0  ;;  %1997 = vadd.xlane.f32.xlu1 %v1833_v42 }
 0x187   :  { %v4806_v41 = vadd.f32 %v4747_v26, %v1250_v32  ;;  %v1251_v10 = vadd.f32 %v3875_v35, %v4595_v38  ;;  %v865_v40 = vpop.f32.mrb[47].mxu0 }
 0x188   :  { %v4812_v44 = vadd.f32 %v4747_v26, %v1248_v34  ;;  %v1249_v33 = vadd.f32 %v4595_v38, %v865_v40  ;;  %v1838_v34 = vmul.f32 %v4628_v3, %v1703_v20 }
 0x189   :  { %v4819_v51 = vadd.f32 %v4747_v26, %v1251_v10  ;;  %v1708_v52 = vmax.f32 %v4806_v41, 0.0 }
 0x18a   :  { %v4822_v45 = vadd.f32 %v4747_v26, %v1249_v33  ;;  %1989 = vadd.xlane.f32.xlu0 %v1829_v47  ;;  %2003 = vadd.xlane.f32.xlu1 %v1836_v58  ;;  %v1706_v47 = vmax.f32 %v4812_v44, 0.0 }
 0x18b   :  { %v1843_v41 = vmul.f32 %v4628_v3, %v1708_v52 }
 0x18c   :  { %v3878_v56 = vpop.f32.mrb[48].mxu0  ;;  %v1841_v39 = vmul.f32 %v4628_v3, %v1706_v47 }
 0x18d   :  { %v1254_v50 = vadd.f32 %v3878_v56, %v4595_v38  ;;  %v878_v62 = vpop.f32.mrb[49].mxu0 }
 0x18e   :  { %v1252_v63 = vadd.f32 %v4595_v38, %v878_v62  ;;  %2001 = vadd.xlane.f32.xlu0 %v1835_v19  ;;  %v3879_v26 = vpop.f32.mrb[50].mxu0  ;;  %2009 = vadd.xlane.f32.xlu1 %v1839_v57  ;;  %v1445_v62 = vcombine.high %v4579_v27, %v4579_v27 }
 0x18f   :  { %v1584_v2 = vadd.f32 %v4828_v54, %v1254_v50  ;;  %v1255_v4 = vadd.f32 %v3879_v26, %v4595_v38  ;;  %v881_v28 = vpop.f32.mrb[51].mxu0  ;;  %v1709_v26 = vmax.f32 %v4819_v51, 0.0 }
 0x190   :  { %v4836_v5 = vadd.f32 %v4828_v54, %v1252_v63  ;;  %v1253_v6 = vadd.f32 %v4595_v38, %v881_v28  ;;  %v4880_v28 = vrot.slane %v1445_v62, %v4577_v24 }
 0x191   :  { %v1712_v1 = vmax.f32 %v1584_v2, 0.0  ;;  %v1585_v48 = vadd.f32 %v4828_v54, %v1255_v4 }
 0x192   :  { %v1583_v49 = vadd.f32 %v4828_v54, %v1253_v6  ;;  %1999 = vadd.xlane.f32.xlu0 %v1834_v7  ;;  %2005 = vadd.xlane.f32.xlu1 %v1837_v12 }
 0x193   :  { %v1847_v13 = vmul.f32 %v4628_v3, %v1712_v1  ;;  %v1713_v14 = vmax.f32 %v1585_v48, 0.0  ;;  %v1707_v48 = vmax.f32 %v4822_v45, 0.0 }
 0x194   :  { %v3882_v15 = vpop.f32.mrb[52].mxu0  ;;  %v1711_v30 = vmax.f32 %v1583_v49, 0.0  ;;  %v1844_v49 = vmul.f32 %v4628_v3, %v1709_v26 }
 0x195   :  { %v1258_v16 = vadd.f32 %v3882_v15, %v4595_v38  ;;  %v894_v8 = vpop.f32.mrb[53].mxu0  ;;  %v1848_v9 = vmul.f32 %v4628_v3, %v1713_v14  ;;  %v1842_v20 = vmul.f32 %v4628_v3, %v1707_v48 }
 0x196   :  { %v1256_v17 = vadd.f32 %v4595_v38, %v894_v8  ;;  %2025 = vadd.xlane.f32.xlu0 %v1847_v13  ;;  %v3883_v60 = vpop.f32.mrb[54].mxu0  ;;  %2011 = vadd.xlane.f32.xlu1 %v1840_v23  ;;  %v1846_v42 = vmul.f32 %v4628_v3, %v1711_v30  ;;  %v4893_v8 = vrot.slane %v4880_v28, %v4577_v24 }
 0x197   :  { %v1588_v21 = vadd.f32 %v4828_v54, %v1258_v16  ;;  %v1259_v25 = vadd.f32 %v3883_v60, %v4595_v38  ;;  %v897_v29 = vpop.f32.mrb[55].mxu0  ;;  %v1710_v60 = vmax.f32 %v4836_v5, 0.0 }
 0x198   :  { %v4852_v61 = vadd.f32 %v4828_v54, %v1256_v17  ;;  %v1257_v31 = vadd.f32 %v4595_v38, %v897_v29  ;;  %v4904_v29 = vrot.slane %v4893_v8, %v4586_v36 }
 0x199   :  { %v1589_v32 = vadd.f32 %v4828_v54, %v1259_v25  ;;  %v1716_v35 = vmax.f32 %v1588_v21, 0.0  ;;  %v1845_v52 = vmul.f32 %v4628_v3, %v1710_v60 }
 0x19a   :  { %v4858_v37 = vadd.f32 %v4828_v54, %v1257_v31  ;;  %2027 = vadd.xlane.f32.xlu0 %v1848_v9  ;;  %2007 = vadd.xlane.f32.xlu1 %v1838_v34  ;;  %v1714_v5 = vmax.f32 %v4852_v61, 0.0 }
 0x19b   :  { %v1717_v59 = vmax.f32 %v1589_v32, 0.0  ;;  %v1851_v50 = vmul.f32 %v4628_v3, %v1716_v35 }
 0x19c   :  { %v3886_v53 = vpop.f32.mrb[56].mxu0  ;;  %v1715_v61 = vmax.f32 %v4858_v37, 0.0  ;;  %v1849_v47 = vmul.f32 %v4628_v3, %v1714_v5 }
 0x19d   :  { %v1262_v10 = vadd.f32 %v3886_v53, %v4595_v38  ;;  %v910_v40 = vpop.f32.mrb[57].mxu0  ;;  %v1852_v4 = vmul.f32 %v4628_v3, %v1717_v59 }
 0x19e   :  { %v1260_v43 = vadd.f32 %v4595_v38, %v910_v40  ;;  %2023 = vadd.xlane.f32.xlu0 %v1846_v42  ;;  %v3887_v33 = vpop.f32.mrb[58].mxu0  ;;  %2017 = vadd.xlane.f32.xlu1 %v1843_v41 }
 0x19f   :  { %v1592_v46 = vadd.f32 %v4828_v54, %v1262_v10  ;;  %v1263_v55 = vadd.f32 %v3887_v33, %v4595_v38  ;;  %v913_v58 = vpop.f32.mrb[59].mxu0 }
 0x1a0   :  { %v1590_v56 = vadd.f32 %v4828_v54, %v1260_v43  ;;  %v1261_v19 = vadd.f32 %v4595_v38, %v913_v58 }
 0x1a1   :  { %v1593_v44 = vadd.f32 %v4828_v54, %v1263_v55  ;;  %v1720_v2 = vmax.f32 %v1592_v46, 0.0 }
 0x1a2   :  { %v1591_v63 = vadd.f32 %v4828_v54, %v1261_v19  ;;  %2033 = vadd.xlane.f32.xlu0 %v1851_v50  ;;  %2013 = vadd.xlane.f32.xlu1 %v1841_v39  ;;  %v1718_v13 = vmax.f32 %v1590_v56, 0.0 }
 0x1a3   :  { %v1855_v16 = vmul.f32 %v4628_v3, %v1720_v2  ;;  %v1721_v21 = vmax.f32 %v1593_v44, 0.0  ;;  %v1850_v44 = vmul.f32 %v4628_v3, %v1715_v61 }
 0x1a4   :  { %v3890_v57 = vpop.f32.mrb[60].mxu0  ;;  %v1853_v25 = vmul.f32 %v4628_v3, %v1718_v13  ;;  %v1719_v53 = vmax.f32 %v1591_v63, 0.0 }
 0x1a5   :  { %v1266_v27 = vadd.f32 %v3890_v57, %v4595_v38  ;;  %v926_v6 = vpop.f32.mrb[61].mxu0  ;;  %v1856_v40 = vmul.f32 %v4628_v3, %v1721_v21 }
 0x1a6   :  { %v1264_v7 = vadd.f32 %v4595_v38, %v926_v6  ;;  %2035 = vadd.xlane.f32.xlu0 %v1852_v4  ;;  %v3891_v1 = vpop.f32.mrb[62].mxu0  ;;  %2019 = vadd.xlane.f32.xlu1 %v1844_v49  ;;  %v1854_v55 = vmul.f32 %v4628_v3, %v1719_v53 }
 0x1a7   :  { %v1596_v51 = vadd.f32 %v4828_v54, %v1266_v27  ;;  %v1267_v11 = vadd.f32 %v3891_v1, %v4595_v38  ;;  %v929_v12 = vpop.f32.mrb[63].mxu0 }
 0x1a8   :  { %v1594_v14 = vadd.f32 %v4828_v54, %v1264_v7  ;;  %v1265_v15 = vadd.f32 %v4595_v38, %v929_v12 }
 0x1a9   :  { %v1597_v45 = vadd.f32 %v4828_v54, %v1267_v11  ;;  %v1724_v46 = vmax.f32 %v1596_v51, 0.0 }
 0x1aa   :  { %v4897_v17 = vadd.f32 %v4828_v54, %v1265_v15  ;;  %2041 = vadd.xlane.f32.xlu0 %v1855_v16  ;;  %2015 = vadd.xlane.f32.xlu1 %v1842_v20  ;;  %v1722_v26 = vmax.f32 %v1594_v14, 0.0 }
 0x1ab   :  { %v1725_v50 = vmax.f32 %v1597_v45, 0.0  ;;  %v1859_v57 = vmul.f32 %v4628_v3, %v1724_v46 }
 0x1ac   :  { %v3894_v23 = vpop.f32.mrb[64].mxu0  ;;  %v1723_v1 = vmax.f32 %v4897_v17, 0.0  ;;  %v1857_v51 = vmul.f32 %v4628_v3, %v1722_v26 }
 0x1ad   :  { %v1270_v30 = vadd.f32 %v3894_v23, %v4595_v38  ;;  %v942_v31 = vpop.f32.mrb[65].mxu0  ;;  %v1860_v7 = vmul.f32 %v4628_v3, %v1725_v50 }
 0x1ae   :  { %v1268_v54 = vadd.f32 %v4595_v38, %v942_v31  ;;  %2037 = vadd.xlane.f32.xlu0 %v1853_v25  ;;  %v3895_v9 = vpop.f32.mrb[66].mxu0  ;;  %2021 = vadd.xlane.f32.xlu1 %v1845_v52  ;;  %v1858_v23 = vmul.f32 %v4628_v3, %v1723_v1 }
 0x1af   :  { %v1600_v32 = vadd.f32 %v4904_v29, %v1270_v30  ;;  %v1271_v34 = vadd.f32 %v3895_v9, %v4595_v38  ;;  %v945_v35 = vpop.f32.mrb[67].mxu0  ;;  %v1461_v30 = vcombine.high %v4880_v28, %v4880_v28 }
 0x1b0   :  { %v1598_v42 = vadd.f32 %v4904_v29, %v1268_v54  ;;  %v1269_v10 = vadd.f32 %v4595_v38, %v945_v35 }
 0x1b1   :  { %v1601_v43 = vadd.f32 %v4904_v29, %v1271_v34  ;;  %v1728_v6 = vmax.f32 %v1600_v32, 0.0  ;;  %v4963_v34 = vand.u32 127, %v1449_v18  ;;  %v4967_v28 = vrot.slane %v1461_v30, %v4577_v24 }
 0x1b2   :  { %v4917_v33 = vadd.f32 %v4904_v29, %v1269_v10  ;;  %2043 = vadd.xlane.f32.xlu0 %v1856_v40  ;;  %2029 = vadd.xlane.f32.xlu1 %v1849_v47  ;;  %v1726_v14 = vmax.f32 %v1598_v42, 0.0 }
 0x1b3   :  { %v1863_v16 = vmul.f32 %v4628_v3, %v1728_v6  ;;  %v1729_v60 = vmax.f32 %v1601_v43, 0.0  ;;  %v2446_v40 = vadd.s32 4294967288, %v4963_v34  ;;  %v2467_v43 = vadd.s32 4294967264, %v4963_v34 }
 0x1b4   :  { %v3898_v41 = vpop.f32.mrb[68].mxu0  ;;  %v1861_v9 = vmul.f32 %v4628_v3, %v1726_v14  ;;  %v1727_v5 = vmax.f32 %v4917_v33, 0.0  ;;  %v2474_v1 = vadd.s32 4294967256, %v4963_v34  ;;  %v2481_v14 = vadd.s32 4294967248, %v4963_v34 }
 0x1b5   :  { %v1274_v58 = vadd.f32 %v3898_v41, %v4595_v38  ;;  %v958_v59 = vpop.f32.mrb[69].mxu0  ;;  %v1864_v52 = vmul.f32 %v4628_v3, %v1729_v60  ;;  %v5001_v26 = vsub.s32 %v2446_v40, %v4571_v22 }
 0x1b6   :  { %v1272_v56 = vadd.f32 %v4595_v38, %v958_v59  ;;  %2039 = vadd.xlane.f32.xlu0 %v1854_v55  ;;  %v3899_v19 = vpop.f32.mrb[70].mxu0  ;;  %2031 = vadd.xlane.f32.xlu1 %v1850_v44  ;;  %v1862_v59 = vmul.f32 %v4628_v3, %v1727_v5 }
 0x1b7   :  { %v1604_v62 = vadd.f32 %v4904_v29, %v1274_v58  ;;  %v1275_v37 = vadd.f32 %v3899_v19, %v4595_v38  ;;  %v961_v63 = vpop.f32.mrb[71].mxu0  ;;  %v4984_v19 = vrot.slane %v4967_v28, %v4586_v36 }
 0x1b8   :  { %v4928_v39 = vadd.f32 %v4904_v29, %v1272_v56  ;;  %v1273_v2 = vadd.f32 %v4595_v38, %v961_v63 }
 0x1b9   :  { %v1605_v4 = vadd.f32 %v4904_v29, %v1275_v37  ;;  %v1732_v54 = vmax.f32 %v1604_v62, 0.0  ;;  %v4990_v62 = vstv %s5898_s7  ;;  %v4997_v37 = vsub.s32 %v4963_v34, %v4571_v22 }
 0x1ba   :  { %v4934_v27 = vadd.f32 %v4904_v29, %v1273_v2  ;;  %2049 = vadd.xlane.f32.xlu0 %v1859_v57  ;;  %2051 = vadd.xlane.f32.xlu1 %v1860_v7  ;;  %v1730_v41 = vmax.f32 %v4928_v39, 0.0  ;;  %v5004_v2 = vsub.s32 %v2467_v43, %v4571_v22 }
 0x1bb   :  { %v1733_v33 = vmax.f32 %v1605_v4, 0.0  ;;  %v1867_v18 = vmul.f32 %v4628_v3, %v1732_v54 }
 0x1bc   :  { %v3902_v48 = vpop.f32.mrb[72].mxu0  ;;  %v1731_v50 = vmax.f32 %v4934_v27, 0.0  ;;  %v1865_v4 = vmul.f32 %v4628_v3, %v1730_v41 }
 0x1bd   :  { %v1278_v49 = vadd.f32 %v3902_v48, %v4595_v38  ;;  %v974_v11 = vpop.f32.mrb[73].mxu0  ;;  %v1868_v63 = vmul.f32 %v4628_v3, %v1733_v33  ;;  %v2460_v48 = vadd.s32 4294967272, %v4963_v34 }
 0x1be   :  { %v1276_v12 = vadd.f32 %v4595_v38, %v974_v11  ;;  %2045 = vadd.xlane.f32.xlu0 %v1857_v51  ;;  %v3903_v13 = vpop.f32.mrb[74].mxu0  ;;  %2057 = vadd.xlane.f32.xlu1 %v1863_v16  ;;  %v2509_v51 = vadd.s32 4294967216, %v4963_v34  ;;  %v2495_v16 = vadd.s32 4294967232, %v4963_v34 }
 0x1bf   :  { %v4942_v15 = vadd.f32 %v4904_v29, %v1278_v49  ;;  %v1279_v45 = vadd.f32 %v3903_v13, %v4595_v38  ;;  %v977_v17 = vpop.f32.mrb[75].mxu0 }
 0x1c0   :  { %v4947_v20 = vadd.f32 %v4904_v29, %v1276_v12  ;;  %v1277_v21 = vadd.f32 %v4595_v38, %v977_v17  ;;  %v1866_v12 = vmul.f32 %v4628_v3, %v1731_v50  ;;  %v5044_v40 = vsub.s32 %v2509_v51, %v4571_v22 }
 0x1c1   :  { %v4952_v25 = vadd.f32 %v4904_v29, %v1279_v45  ;;  %v1736_v45 = vmax.f32 %v4942_v15, 0.0 }
 0x1c2   :  { %v4957_v31 = vadd.f32 %v4904_v29, %v1277_v21  ;;  %2047 = vadd.xlane.f32.xlu0 %v1858_v23  ;;  %2053 = vadd.xlane.f32.xlu1 %v1861_v9  ;;  %v1734_v43 = vmax.f32 %v4947_v20, 0.0  ;;  %v5060_v20 = vld [vmem:[%s5894_s3] ss:$0 sm:$0xff] }
 0x1c3   :  { %v1871_v33 = vmul.f32 %v4628_v3, %v1736_v45 }
 0x1c4   :  { %v3906_v32 = vpop.f32.mrb[76].mxu0 }
 0x1c5   :  { %v1282_v35 = vadd.f32 %v3906_v32, %v4595_v38  ;;  %v990_v53 = vpop.f32.mrb[77].mxu0 }
 0x1c6   :  { %v1280_v42 = vadd.f32 %v4595_v38, %v990_v53  ;;  %2059 = vadd.xlane.f32.xlu0 %v1864_v52  ;;  %v3907_v10 = vpop.f32.mrb[78].mxu0  ;;  %2065 = vadd.xlane.f32.xlu1 %v1867_v18  ;;  %v5052_v18 = vsub.s32 %v2495_v16, %v4571_v22 }
 0x1c7   :  { %v1612_v61 = vadd.f32 %v4904_v29, %v1282_v35  ;;  %v1283_v47 = vadd.f32 %v3907_v10, %v4595_v38  ;;  %v993_v46 = vpop.f32.mrb[79].mxu0  ;;  %v5034_v35 = vsub.s32 %v2474_v1, %v4571_v22 }
 0x1c8   :  { %v4977_v55 = vadd.f32 %v4904_v29, %v1280_v42  ;;  %v1281_v58 = vadd.f32 %v4595_v38, %v993_v46 }
 0x1c9   :  { %v1613_v56 = vadd.f32 %v4904_v29, %v1283_v47  ;;  %v1740_v39 = vmax.f32 %v1612_v61, 0.0  ;;  %v5049_v61 = vsub.s32 %v2481_v14, %v4571_v22 }
 0x1ca   :  { %v4993_v44 = vadd.f32 %v4904_v29, %v1281_v58  ;;  %2055 = vadd.xlane.f32.xlu0 %v1862_v59  ;;  %v2453_v29 = vadd.s32 4294967280, %v4963_v34  ;;  %v1926_v27 = vpop.xlane.xlu0 %1925  ;;  %2067 = vadd.xlane.f32.xlu1 %v1868_v63 }
 0x1cb   :  { %v5012_v49 = vpop.xlane.xlu1 %1933  ;;  %v1741_v17 = vmax.f32 %v1613_v56, 0.0  ;;  %v2183_v30 = vadd.f32 %v4990_v62, %v1926_v27  ;;  %v1875_v5 = vmul.f32 %v4628_v3, %v1740_v39  ;;  %v2488_v39 = vadd.s32 4294967240, %v4963_v34 }
 0x1cc   :  { %v3910_v57 = vpop.f32.mrb[80].mxu0  ;;  %v5031_v15 = vsub.s32 %v2453_v29, %v4571_v22  ;;  %v1737_v29 = vmax.f32 %v4952_v25, 0.0 }
 0x1cd   :  { %v1286_v6 = vadd.f32 %v3910_v57, %v4595_v38  ;;  %v1006_v7 = vpop.f32.mrb[81].mxu0  ;;  %v2445_v47 = vrot.slane %v2183_v30, %v4997_v37  ;;  %v1876_v59 = vmul.f32 %v4628_v3, %v1741_v17  ;;  %v2516_v57 = vadd.s32 4294967208, %v4963_v34 }
 0x1ce   :  { %v1284_v11 = vadd.f32 %v4595_v38, %v1006_v7  ;;  %2061 = vadd.xlane.f32.xlu0 %v1865_v4  ;;  %v3911_v13 = vpop.f32.mrb[82].mxu0  ;;  %v1928_v32 = vpop.xlane.xlu0 %1927  ;;  %2063 = vadd.xlane.f32.xlu1 %v1866_v12  ;;  %v2502_v4 = vadd.s32 4294967224, %v4963_v34  ;;  %v2187_v17 = vadd.f32 %v4990_v62, %v5012_v49 }
 0x1cf   :  { %v5020_v60 = vadd.f32 %v4984_v19, %v1286_v6  ;;  %v1287_v21 = vadd.f32 %v3911_v13, %v4595_v38  ;;  %v1009_v23 = vpop.f32.mrb[83].mxu0  ;;  %v2184_v53 = vadd.f32 %v4990_v62, %v1928_v32  ;;  %v1936_v42 = vpop.xlane.xlu1 %1935 }
 0x1d0   :  { %v1614_v54 = vadd.f32 %v4984_v19, %v1284_v11  ;;  %v1285_v9 = vadd.f32 %v4595_v38, %v1009_v23  ;;  %v5041_v38 = vsub.s32 %v2460_v48, %v4571_v22  ;;  %v1735_v48 = vmax.f32 %v4957_v31, 0.0  ;;  %v5075_v11 = vld [vmem:[%s5897_s6] ss:$0 sm:$0xff]  ;;  %s4408_s6 = smov [#allocation10]  }
 0x1d1   :  { %v5028_v52 = vadd.f32 %v4984_v19, %v1287_v21  ;;  %v2450_v46 = vrot.slane %v2184_v53, %v5001_v26  ;;  %v1869_v25 = vmul.f32 %v5075_v11, %v1734_v43  ;;  %v2188_v21 = vadd.f32 %v4990_v62, %v1936_v42  ;;  %s3558_s2 = sshll.u32 %s4408_s6, 4  ;;  %s3559_s2 = int_to_ptr.vmem [resolvable:$true] %s3558_s2 }
 0x1d2   :  { %v5038_v10 = vadd.f32 %v4984_v19, %v1285_v9  ;;  %2081 = vadd.xlane.f32.xlu0 %v1875_v5  ;;  %v1742_v41 = vmax.f32 %v1614_v54, 0.0  ;;  %v1930_v56 = vpop.xlane.xlu0 %1929  ;;  %2073 = vadd.xlane.f32.xlu1 %v1871_v33  ;;  %v5093_v43 = vsub.s32 %v2488_v39, %v4571_v22  ;;  %v1872_v42 = vmul.f32 %v5075_v11, %v1737_v29  ;;  %s4348_s10 = scalar_lea.vmem %s3559_s2, 128  ;;  %p4353_p11 = scmp.lt.s32.totalorder %s3559_s2, %s3559_s2 }
 0x1d3   :  { %v2452_v3 = vsel %vm2451_vm1, %v2450_v46, %v2445_v47  ;;  %v2185_v27 = vadd.f32 %v4990_v62, %v1930_v56  ;;  %v1946_v6 = vpop.xlane.xlu1 %1945  ;;  %v5097_v33 = vsub.s32 %v2516_v57, %v4571_v22  ;;  %v1738_v46 = vmax.f32 %v4977_v55, 0.0  ;;  %p4349_p10 = scmp.ne.s32.totalorder %s3559_s2, %s4348_s10  ;;  %p4354_p12 = scmp.lt.s32.totalorder %s4348_s10, %s4348_s10 }
 0x1d4   :  { %v3914_v58 = vpop.f32.mrb[84].mxu0  ;;  %v1877_v31 = vmul.f32 %v5075_v11, %v1742_v41  ;;  %v5104_v56 = vsub.s32 %v2502_v4, %v4571_v22  ;;  %v2478_v39 = vrot.slane %v2188_v21, %v5034_v35 }
 0x1d5   :  { %v1290_v50 = vadd.f32 %v5060_v20, %v3914_v58  ;;  %v1022_v63 = vpop.f32.mrb[85].mxu0  ;;  %v2457_v14 = vrot.slane %v2185_v27, %v5031_v15  ;;  %p4355_p13 = por %p4354_p12, %p4353_p11 }
 0x1d6   :  { %v1288_v7 = vadd.f32 %v5060_v20, %v1022_v63  ;;  %2083 = vadd.xlane.f32.xlu0 %v1876_v59  ;;  %v3915_v1 = vpop.f32.mrb[86].mxu0  ;;  %v1932_v23 = vpop.xlane.xlu0 %1931  ;;  %2069 = vadd.xlane.f32.xlu1 %v1869_v25  ;;  %v1870_v59 = vmul.f32 %v5075_v11, %v1735_v48  ;;  %v2471_v63 = vrot.slane %v2187_v17, %v5004_v2 }
 0x1d7   :  { %v1620_v51 = vadd.f32 %v4984_v19, %v1290_v50  ;;  %v1291_v12 = vadd.f32 %v5060_v20, %v3915_v1  ;;  %v1025_v13 = vpop.f32.mrb[87].mxu0  ;;  %v2459_v9 = vsel %vm2458_vm2, %v2457_v14, %v2452_v3  ;;  %v2186_v5 = vadd.f32 %v4990_v62, %v1932_v23  ;;  %v1942_v32 = vpop.xlane.xlu1 %1941  ;;  %p4356_p0 = pnand %p4355_p13, %p4349_p10 }
 0x1d8   :  { %v1618_v16 = vadd.f32 %v4984_v19, %v1288_v7  ;;  %v1289_v45 = vadd.f32 %v5060_v20, %v1025_v13  ;;  %v1739_v50 = vmax.f32 %v4993_v44, 0.0  ;;  %v2193_v17 = vadd.f32 %v4990_v62, %v1946_v6 }
 0x1d9   :  { %v1748_v30 = vmax.f32 %v1620_v51, 0.0  ;;  %v1621_v54 = vadd.f32 %v4984_v19, %v1291_v12  ;;  %v2464_v41 = vrot.slane %v2186_v5, %v5041_v38  ;;  %v2191_v21 = vadd.f32 %v4990_v62, %v1942_v32 }
 0x1da   :  { %v5090_v53 = vadd.f32 %v4984_v19, %v1289_v45  ;;  %2085 = vadd.xlane.f32.xlu0 %v1877_v31  ;;  %v1746_v49 = vmax.f32 %v1618_v16, 0.0  ;;  %v1938_v57 = vpop.xlane.xlu0 %1937  ;;  %2075 = vadd.xlane.f32.xlu1 %v1872_v42 }
 0x1db   :  { %v1883_v47 = vmul.f32 %v5075_v11, %v1748_v30  ;;  %v2466_v3 = vsel %vm2465_vm3, %v2464_v41, %v2459_v9  ;;  %v1749_v27 = vmax.f32 %v1621_v54, 0.0  ;;  %v2189_v7 = vadd.f32 %v4990_v62, %v1938_v57  ;;  %v1948_v1 = vpop.xlane.xlu1 %1947 }
 0x1dc   :  { %v3918_v58 = vpop.f32.mrb[88].mxu0  ;;  %v2473_v48 = vsel %vm2472_vm4, %v2471_v63, %v2466_v3  ;;  %v1881_v13 = vmul.f32 %v5075_v11, %v1746_v49  ;;  %v1747_v9 = vmax.f32 %v5090_v53, 0.0  ;;  %v2194_v6 = vadd.f32 %v4990_v62, %v1948_v1 }
 0x1dd   :  { %v1294_v29 = vadd.f32 %v5060_v20, %v3918_v58  ;;  %v1038_v55 = vpop.f32.mrb[89].mxu0  ;;  %v2480_v14 = vsel %vm2479_vm5, %v2478_v39, %v2473_v48  ;;  %v2485_v16 = vrot.slane %v2189_v7, %v5049_v61  ;;  %v1884_v53 = vmul.f32 %v5075_v11, %v1749_v27 }
 0x1de   :  { %v1292_v4 = vadd.f32 %v5060_v20, %v1038_v55  ;;  %2097 = vadd.xlane.f32.xlu0 %v1883_v47  ;;  %v3919_v44 = vpop.f32.mrb[90].mxu0  ;;  %v1940_v23 = vpop.xlane.xlu0 %1939  ;;  %2071 = vadd.xlane.f32.xlu1 %v1870_v59  ;;  %v1873_v47 = vmul.f32 %v5075_v11, %v1738_v46  ;;  %v1874_v59 = vmul.f32 %v5075_v11, %v1739_v50  ;;  %v2523_v63 = vadd.s32 4294967200, %v4963_v34 }
 0x1df   :  { %v5115_v51 = vadd.f32 %v4984_v19, %v1294_v29  ;;  %v1295_v25 = vadd.f32 %v5060_v20, %v3919_v44  ;;  %v1041_v12 = vpop.f32.mrb[91].mxu0  ;;  %v2487_v54 = vsel %vm2486_vm6, %v2485_v16, %v2480_v14  ;;  %v2190_v5 = vadd.f32 %v4990_v62, %v1940_v23  ;;  %v1944_v49 = vpop.xlane.xlu1 %1943 }
 0x1e0   :  { %v5122_v45 = vadd.f32 %v4984_v19, %v1292_v4  ;;  %v1293_v31 = vadd.f32 %v5060_v20, %v1041_v12  ;;  %v2192_v32 = vadd.f32 %v4990_v62, %v1944_v49  ;;  %v1744_v39 = vmax.f32 %v5020_v60, 0.0 }
 0x1e1   :  { %v5128_v30 = vadd.f32 %v4984_v19, %v1295_v25  ;;  %v2492_v41 = vrot.slane %v2190_v5, %v5093_v43  ;;  %v2499_v57 = vrot.slane %v2191_v21, %v5052_v18  ;;  %v2513_v3 = vrot.slane %v2193_v17, %v5044_v40 }
 0x1e2   :  { %v5134_v42 = vadd.f32 %v4984_v19, %v1293_v31  ;;  %2093 = vadd.xlane.f32.xlu0 %v1881_v13  ;;  %v2506_v29 = vrot.slane %v2192_v32, %v5104_v56  ;;  %2077 = vadd.xlane.f32.xlu1 %v1873_v47  ;;  %v1882_v4 = vmul.f32 %v5075_v11, %v1747_v9  ;;  %v1752_v13 = vmax.f32 %v5115_v51, 0.0 }
 0x1e3   :  { %v2494_v7 = vsel %vm2493_vm7, %v2492_v41, %v2487_v54  ;;  %v1954_v1 = vpop.xlane.xlu1 %1953  ;;  %v2520_v60 = vrot.slane %v2194_v6, %v5097_v33  ;;  %v1491_v17 = vcombine.high %v4893_v8, %v4893_v8  ;;  %v5170_v54 = vsub.s32 %v2523_v63, %v4571_v22 }
 0x1e4   :  { %v3922_v58 = vpop.f32.mrb[92].mxu0  ;;  %v2501_v44 = vsel %vm2500_vm8, %v2499_v57, %v2494_v7  ;;  %v1745_v49 = vmax.f32 %v5028_v52, 0.0  ;;  %v1879_v6 = vmul.f32 %v5075_v11, %v1744_v39  ;;  %v1750_v47 = vmax.f32 %v5122_v45, 0.0 }
 0x1e5   :  { %v1298_v55 = vadd.f32 %v5060_v20, %v3922_v58  ;;  %v1054_v46 = vpop.f32.mrb[93].mxu0  ;;  %v2508_v14 = vsel %vm2507_vm9, %v2506_v29, %v2501_v44  ;;  %v1887_v58 = vmul.f32 %v5075_v11, %v1752_v13  ;;  %v2530_v63 = vadd.s32 4294967192, %v4963_v34 }
 0x1e6   :  { %v1296_v50 = vadd.f32 %v5060_v20, %v1054_v46  ;;  %2099 = vadd.xlane.f32.xlu0 %v1884_v53  ;;  %v3923_v27 = vpop.f32.mrb[94].mxu0  ;;  %v2515_v21 = vsel %vm2514_vm10, %v2513_v3, %v2508_v14  ;;  %2079 = vadd.xlane.f32.xlu1 %v1874_v59  ;;  %v5184_v59 = vrot.slane %v1491_v17, %v4586_v36  ;;  %v1743_v39 = vmax.f32 %v5038_v10, 0.0 }
 0x1e7   :  { %v5154_v48 = vadd.f32 %v4984_v19, %v1298_v55  ;;  %v1299_v25 = vadd.f32 %v5060_v20, %v3923_v27  ;;  %v1057_v12 = vpop.f32.mrb[95].mxu0  ;;  %v2522_v51 = vsel %vm2521_vm11, %v2520_v60, %v2515_v21  ;;  %v1950_v9 = vpop.xlane.xlu1 %1949  ;;  %v2537_v57 = vadd.s32 4294967184, %v4963_v34 }
 0x1e8   :  { %v5160_v16 = vadd.f32 %v4984_v19, %v1296_v50  ;;  %v1297_v31 = vadd.f32 %v5060_v20, %v1057_v12  ;;  %v2195_v8 = vadd.f32 %v4990_v62, %v1950_v9  ;;  %v2544_v45 = vadd.s32 4294967176, %v4963_v34 }
 0x1e9   :  { %v5167_v23 = vadd.f32 %v4984_v19, %v1299_v25  ;;  %v1880_v50 = vmul.f32 %v5075_v11, %v1745_v49  ;;  %v1753_v60 = vmax.f32 %v5128_v30, 0.0  ;;  %v1885_v12 = vmul.f32 %v5075_v11, %v1750_v47 }
 0x1ea   :  { %v5174_v5 = vadd.f32 %v4984_v19, %v1297_v31  ;;  %2095 = vadd.xlane.f32.xlu0 %v1882_v4  ;;  %v2527_v19 = vrot.slane %v2195_v8, %v5170_v54  ;;  %2089 = vadd.xlane.f32.xlu1 %v1879_v6  ;;  %v1751_v13 = vmax.f32 %v5134_v42, 0.0  ;;  %v5212_v31 = vsub.s32 %v2530_v63, %v4571_v22 }
 0x1eb   :  { %v5179_v32 = vpop.xlane.xlu0 %1965  ;;  %v1956_v29 = vpop.xlane.xlu1 %1955  ;;  %v5215_v17 = vsub.s32 %v2537_v57, %v4571_v22  ;;  %v2197_v30 = vadd.f32 %v4990_v62, %v1954_v1  ;;  %v1756_v21 = vmax.f32 %v5154_v48, 0.0  ;;  %v5223_v42 = vsub.s32 %v2544_v45, %v4571_v22 }
 0x1ec   :  { %v3926_v41 = vpop.f32.mrb[96].mxu0  ;;  %v2529_v3 = vsel %vm2528_vm12, %v2527_v19, %v2522_v51  ;;  %v2198_v49 = vadd.f32 %v4990_v62, %v1956_v29  ;;  %v1878_v6 = vmul.f32 %v5075_v11, %v1743_v39  ;;  %v1888_v48 = vmul.f32 %v5075_v11, %v1753_v60 }
 0x1ed   :  { %v1302_v52 = vadd.f32 %v5060_v20, %v3926_v41  ;;  %v1070_v53 = vpop.f32.mrb[97].mxu0  ;;  %v1886_v19 = vmul.f32 %v5075_v11, %v1751_v13  ;;  %v1891_v57 = vmul.f32 %v5075_v11, %v1756_v21  ;;  %v1757_v13 = vmax.f32 %v5167_v23, 0.0 }
 0x1ee   :  { %v1300_v55 = vadd.f32 %v5060_v20, %v1070_v53  ;;  %2105 = vadd.xlane.f32.xlu0 %v1887_v58  ;;  %v3927_v46 = vpop.f32.mrb[98].mxu0  ;;  %2091 = vadd.xlane.f32.xlu1 %v1880_v50  ;;  %v1755_v53 = vmax.f32 %v5174_v5, 0.0  ;;  %v2548_v29 = vrot.slane %v2198_v49, %v5223_v42  ;;  %v1754_v5 = vmax.f32 %v5160_v16, 0.0 }
 0x1ef   :  { %v5195_v7 = vadd.f32 %v5184_v59, %v1302_v52  ;;  %v1303_v27 = vadd.f32 %v5060_v20, %v3927_v46  ;;  %v5199_v4 = vpop.xlane.xlu0 %1967  ;;  %v1073_v10 = vpop.f32.mrb[99].mxu0  ;;  %v2541_v52 = vrot.slane %v2197_v30, %v5215_v17 }
 0x1f0   :  { %v5203_v44 = vadd.f32 %v5184_v59, %v1300_v55  ;;  %v1301_v25 = vadd.f32 %v5060_v20, %v1073_v10  ;;  %v1952_v51 = vpop.xlane.xlu1 %1951  ;;  %v1890_v49 = vmul.f32 %v5075_v11, %v1755_v53  ;;  %v1889_v23 = vmul.f32 %v5075_v11, %v1754_v5 }
 0x1f1   :  { %v5209_v14 = vadd.f32 %v5184_v59, %v1303_v27  ;;  %v2196_v8 = vadd.f32 %v4990_v62, %v1952_v51 }
 0x1f2   :  { %v5220_v9 = vadd.f32 %v5184_v59, %v1301_v25  ;;  %2101 = vadd.xlane.f32.xlu0 %v1885_v12  ;;  %2087 = vadd.xlane.f32.xlu1 %v1878_v6 }
 0x1f3   :  { %v1978_v47 = vpop.xlane.xlu0 %1977  ;;  %v2534_v41 = vrot.slane %v2196_v8, %v5212_v31  ;;  %v1761_v16 = vmax.f32 %v5209_v14, 0.0  ;;  %v1892_v14 = vmul.f32 %v5075_v11, %v1757_v13 }
 0x1f4   :  { %v3930_v1 = vpop.f32.mrb[100].mxu0  ;;  %v1962_v63 = vpop.xlane.xlu1 %1961 }
 0x1f5   :  { %v1306_v58 = vadd.f32 %v5060_v20, %v3930_v1  ;;  %v1086_v22 = vpop.f32.mrb[101].mxu0  ;;  %v2536_v55 = vsel %vm2535_vm13, %v2534_v41, %v2529_v3  ;;  %v1493_v1 = vcombine.high %v4967_v28, %v4967_v28 }
 0x1f6   :  { %v1304_v39 = vadd.f32 %v5060_v20, %v1086_v22  ;;  %2107 = vadd.xlane.f32.xlu0 %v1888_v48  ;;  %v3931_v45 = vpop.f32.mrb[102].mxu0  ;;  %v2543_v60 = vsel %vm2542_vm14, %v2541_v52, %v2536_v55  ;;  %2113 = vadd.xlane.f32.xlu1 %v1891_v57  ;;  %v5267_v48 = vadd.f32 %v4990_v62, %v5179_v32  ;;  %v1760_v22 = vmax.f32 %v5195_v7, 0.0 }
 0x1f7   :  { %v5239_v46 = vadd.f32 %v5184_v59, %v1306_v58  ;;  %v1307_v50 = vadd.f32 %v5060_v20, %v3931_v45  ;;  %v1974_v27 = vpop.xlane.xlu0 %1973  ;;  %v1089_v10 = vpop.f32.mrb[103].mxu0  ;;  %v5250_v3 = vsel %vm2549_vm15, %v2548_v29, %v2543_v60  ;;  %v5275_v52 = vadd.f32 %v4990_v62, %v5199_v4 }
 0x1f8   :  { %v5245_v25 = vadd.f32 %v5184_v59, %v1304_v39  ;;  %v1305_v12 = vadd.f32 %v5060_v20, %v1089_v10  ;;  %v1958_v21 = vpop.xlane.xlu1 %1957  ;;  %v1759_v39 = vmax.f32 %v5220_v9, 0.0  ;;  %v1896_v45 = vmul.f32 %v5075_v11, %v1761_v16 }
 0x1f9   :  { %v5253_v30 = vadd.f32 %v5184_v59, %v1307_v50  ;;  %v2201_v55 = vadd.f32 %v4990_v62, %v1962_v63  ;;  %v5286_v4 = vadd.f32 %v4990_v62, %v1978_v47  ;;  %v5293_v9 = vrot.slane %v1493_v1, %v4586_v36 }
 0x1fa   :  { %v5256_v51 = vadd.f32 %v5184_v59, %v1305_v12  ;;  %2103 = vadd.xlane.f32.xlu0 %v1886_v19  ;;  %2111 = vadd.xlane.f32.xlu1 %v1890_v49  ;;  %v1758_v19 = vmax.f32 %v5203_v44, 0.0  ;;  %v2199_v5 = vadd.f32 %v4990_v62, %v1958_v21  ;;  %v5297_v60 = vadd.f32 %v4990_v62, %v1974_v27 }
 0x1fb   :  { %v5260_v8 = vpop.xlane.xlu0 %1979  ;;  %v2573_v47 = vrot.slane %v5267_v48, %v5004_v2  ;;  %v1764_v63 = vmax.f32 %v5239_v46, 0.0  ;;  %v2578_v27 = vrot.slane %v5275_v52, %v5034_v35  ;;  %v1895_v1 = vmul.f32 %v5075_v11, %v1760_v22 }
 0x1fc   :  { %v3934_v6 = vpop.f32.mrb[104].mxu0  ;;  %v1964_v53 = vpop.xlane.xlu1 %1963  ;;  %v2563_v48 = vrot.slane %v2201_v55, %v5031_v15  ;;  %v2603_v46 = vrot.slane %v5286_v4, %v5044_v40  ;;  %v2593_v52 = vrot.slane %v5297_v60, %v5052_v18 }
 0x1fd   :  { %v1310_v41 = vadd.f32 %v5060_v20, %v3934_v6  ;;  %v1102_v58 = vpop.f32.mrb[105].mxu0  ;;  %v2202_v13 = vadd.f32 %v4990_v62, %v1964_v53  ;;  %v1894_v6 = vmul.f32 %v5075_v11, %v1759_v39  ;;  %v2554_v53 = vrot.slane %v2199_v5, %v4997_v37 }
 0x1fe   :  { %v1308_v28 = vadd.f32 %v5060_v20, %v1102_v58  ;;  %2109 = vadd.xlane.f32.xlu0 %v1889_v23  ;;  %v3935_v32 = vpop.f32.mrb[106].mxu0  ;;  %2123 = vadd.xlane.f32.xlu1 %v1896_v45  ;;  %v1765_v39 = vmax.f32 %v5253_v30, 0.0 }
 0x1ff   :  { %v5280_v57 = vadd.f32 %v5184_v59, %v1310_v41  ;;  %v1311_v7 = vadd.f32 %v5060_v20, %v3935_v32  ;;  %v1976_v29 = vpop.xlane.xlu0 %1975  ;;  %v1105_v44 = vpop.f32.mrb[107].mxu0  ;;  %v1762_v41 = vmax.f32 %v5245_v25, 0.0  ;;  %v2568_v45 = vrot.slane %v2202_v13, %v5041_v38 }
 0x200   :  { %v5289_v50 = vadd.f32 %v5184_v59, %v1308_v28  ;;  %v1309_v10 = vadd.f32 %v5060_v20, %v1105_v44  ;;  %v1960_v16 = vpop.xlane.xlu1 %1959  ;;  %v5336_v13 = vadd.f32 %v4990_v62, %v5260_v8 }
 0x201   :  { %v5300_v12 = vadd.f32 %v5184_v59, %v1311_v7  ;;  %v2200_v21 = vadd.f32 %v4990_v62, %v1960_v16 }
 0x202   :  { %v5307_v49 = vadd.f32 %v5184_v59, %v1309_v10  ;;  %2115 = vadd.xlane.f32.xlu0 %v1892_v14  ;;  %v1893_v14 = vmul.f32 %v5075_v11, %v1758_v19  ;;  %2119 = vadd.xlane.f32.xlu1 %v1894_v6  ;;  %v1899_v19 = vmul.f32 %v5075_v11, %v1764_v63 }
 0x203   :  { %v1986_v23 = vpop.xlane.xlu0 %1985  ;;  %v2558_v28 = vrot.slane %v2200_v21, %v5001_v26 }
 0x204   :  { %v3938_v58 = vpop.f32.mrb[108].mxu0  ;;  %v1970_v7 = vpop.xlane.xlu1 %1969 }
 0x205   :  { %v1314_v22 = vadd.f32 %v5060_v20, %v3938_v58  ;;  %v1118_v32 = vpop.f32.mrb[109].mxu0  ;;  %v2559_v55 = vsel %vm2451_vm1, %v2558_v28, %v2554_v53  ;;  %v2205_v10 = vadd.f32 %v4990_v62, %v1970_v7  ;;  %v2208_v53 = vadd.f32 %v4990_v62, %v1976_v29 }
 0x206   :  { %v1312_v25 = vadd.f32 %v5060_v20, %v1118_v32  ;;  %2121 = vadd.xlane.f32.xlu0 %v1895_v1  ;;  %v3939_v44 = vpop.f32.mrb[110].mxu0  ;;  %v2564_v6 = vsel %vm2458_vm2, %v2563_v48, %v2559_v55  ;;  %2129 = vadd.xlane.f32.xlu1 %v1899_v19  ;;  %v1763_v32 = vmax.f32 %v5256_v51, 0.0  ;;  %v1897_v29 = vmul.f32 %v5075_v11, %v1762_v41 }
 0x207   :  { %v5331_v5 = vadd.f32 %v5184_v59, %v1314_v22  ;;  %v1315_v16 = vadd.f32 %v5060_v20, %v3939_v44  ;;  %v1982_v21 = vpop.xlane.xlu0 %1981  ;;  %v1121_v30 = vpop.f32.mrb[111].mxu0  ;;  %v2569_v58 = vsel %vm2465_vm3, %v2568_v45, %v2564_v6  ;;  %v2583_v28 = vrot.slane %v2205_v10, %v5049_v61 }
 0x208   :  { %v1642_v63 = vadd.f32 %v5184_v59, %v1312_v25  ;;  %v1313_v1 = vadd.f32 %v5060_v20, %v1121_v30  ;;  %v2574_v8 = vsel %vm2472_vm4, %v2573_v47, %v2569_v58  ;;  %v1972_v48 = vpop.xlane.xlu1 %1971  ;;  %v1900_v19 = vmul.f32 %v5075_v11, %v1765_v39 }
 0x209   :  { %v5345_v22 = vadd.f32 %v5184_v59, %v1315_v16  ;;  %v2579_v44 = vsel %vm2479_vm5, %v2578_v27, %v2574_v8  ;;  %v2206_v45 = vadd.f32 %v4990_v62, %v1972_v48  ;;  %v2608_v10 = vrot.slane %v5336_v13, %v5097_v33 }
 0x20a   :  { %v1770_v7 = vmax.f32 %v1642_v63, 0.0  ;;  %v1643_v25 = vadd.f32 %v5184_v59, %v1313_v1  ;;  %2117 = vadd.xlane.f32.xlu0 %v1893_v14  ;;  %v2584_v51 = vsel %vm2486_vm6, %v2583_v28, %v2579_v44  ;;  %v1768_v59 = vmax.f32 %v5280_v57, 0.0  ;;  %2125 = vadd.xlane.f32.xlu1 %v1897_v29 }
 0x20b   :  { %v1988_v55 = vpop.xlane.xlu0 %1987  ;;  %v2598_v27 = vrot.slane %v2208_v53, %v5104_v56  ;;  %v2588_v14 = vrot.slane %v2206_v45, %v5093_v43  ;;  %v2213_v39 = vadd.f32 %v4990_v62, %v1986_v23  ;;  %v2211_v13 = vadd.f32 %v4990_v62, %v1982_v21 }
 0x20c   :  { %v1771_v47 = vmax.f32 %v1643_v25, 0.0  ;;  %v3942_v16 = vpop.f32.mrb[112].mxu0  ;;  %v1905_v30 = vmul.f32 %v5075_v11, %v1770_v7  ;;  %v2214_v63 = vadd.f32 %v4990_v62, %v1988_v55  ;;  %v1996_v1 = vpop.xlane.xlu1 %1995 }
 0x20d   :  { %v1318_v41 = vadd.f32 %v5060_v20, %v3942_v16  ;;  %v1134_v6 = vpop.f32.mrb[113].mxu0  ;;  %v2589_v53 = vsel %vm2493_vm7, %v2588_v14, %v2584_v51  ;;  %v2623_v4 = vrot.slane %v2213_v39, %v5215_v17 }
 0x20e   :  { %v1316_v58 = vadd.f32 %v5060_v20, %v1134_v6  ;;  %2141 = vadd.xlane.f32.xlu0 %v1905_v30  ;;  %v3943_v57 = vpop.f32.mrb[114].mxu0  ;;  %v1906_v25 = vmul.f32 %v5075_v11, %v1771_v47  ;;  %v2594_v23 = vsel %vm2500_vm8, %v2593_v52, %v2589_v53  ;;  %2131 = vadd.xlane.f32.xlu1 %v1900_v19 }
 0x20f   :  { %v1648_v28 = vadd.f32 %v5293_v9, %v1318_v41  ;;  %v1319_v8 = vadd.f32 %v5060_v20, %v3943_v57  ;;  %v1984_v7 = vpop.xlane.xlu0 %1983  ;;  %v1137_v48 = vpop.f32.mrb[115].mxu0  ;;  %v2599_v29 = vsel %vm2507_vm9, %v2598_v27, %v2594_v23  ;;  %v1898_v47 = vmul.f32 %v5075_v11, %v1763_v32 }
 0x210   :  { %v5375_v21 = vadd.f32 %v5293_v9, %v1316_v58  ;;  %v2212_v44 = vadd.f32 %v4990_v62, %v1984_v7  ;;  %v1317_v45 = vadd.f32 %v5060_v20, %v1137_v48  ;;  %v2604_v60 = vsel %vm2514_vm10, %v2603_v46, %v2599_v29  ;;  %v1992_v30 = vpop.xlane.xlu1 %1991 }
 0x211   :  { %v1776_v55 = vmax.f32 %v1648_v28, 0.0  ;;  %v1649_v51 = vadd.f32 %v5293_v9, %v1319_v8  ;;  %v2613_v52 = vrot.slane %v2211_v13, %v5170_v54  ;;  %v1766_v27 = vmax.f32 %v5289_v50, 0.0 }
 0x212   :  { %v2618_v16 = vrot.slane %v2212_v44, %v5212_v31  ;;  %v1647_v14 = vadd.f32 %v5293_v9, %v1317_v45  ;;  %2143 = vadd.xlane.f32.xlu0 %v1906_v25  ;;  %v2609_v19 = vsel %vm2521_vm11, %v2608_v10, %v2604_v60  ;;  %v2628_v13 = vrot.slane %v2214_v63, %v5223_v42 }
 0x213   :  { %v1777_v41 = vmax.f32 %v1649_v51, 0.0  ;;  %v1994_v6 = vpop.xlane.xlu0 %1993  ;;  %v1911_v32 = vmul.f32 %v5075_v11, %v1776_v55  ;;  %v2614_v46 = vsel %vm2528_vm12, %v2613_v52, %v2609_v19  ;;  %v1903_v57 = vmul.f32 %v5075_v11, %v1768_v59  ;;  %2127 = vadd.xlane.f32.xlu1 %v1898_v47 }
 0x214   :  { %v3946_v58 = vpop.f32.mrb[116].mxu0  ;;  %v2218_v53 = vadd.f32 %v4990_v62, %v1996_v1  ;;  %v2619_v28 = vsel %vm2535_vm13, %v2618_v16, %v2614_v46  ;;  %v2216_v50 = vadd.f32 %v4990_v62, %v1992_v30  ;;  %v1775_v39 = vmax.f32 %v1647_v14, 0.0  ;;  %v1998_v25 = vpop.xlane.xlu1 %1997 }
 0x215   :  { %v1322_v10 = vadd.f32 %v5060_v20, %v3946_v58  ;;  %v1150_v8 = vpop.f32.mrb[117].mxu0  ;;  %v2624_v7 = vsel %vm2542_vm14, %v2623_v4, %v2619_v28  ;;  %v2217_v48 = vadd.f32 %v4990_v62, %v1994_v6  ;;  %v1912_v55 = vmul.f32 %v5075_v11, %v1777_v41 }
 0x216   :  { %v1320_v63 = vadd.f32 %v5060_v20, %v1150_v8  ;;  %2153 = vadd.xlane.f32.xlu0 %v1911_v32  ;;  %v3947_v59 = vpop.f32.mrb[118].mxu0  ;;  %v2629_v1 = vsel %vm2549_vm15, %v2628_v13, %v2624_v7  ;;  %v1769_v16 = vmax.f32 %v5300_v12, 0.0  ;;  %v2219_v30 = vadd.f32 %v4990_v62, %v1998_v25 }
 0x217   :  { %v1652_v23 = vadd.f32 %v5293_v9, %v1322_v10  ;;  %v1323_v44 = vadd.f32 %v5060_v20, %v3947_v59  ;;  %v1990_v45 = vpop.xlane.xlu0 %1989  ;;  %v1153_v29 = vpop.f32.mrb[119].mxu0  ;;  %v5409_v51 = vsel %vm3104_vm0, %v2629_v1, %v5250_v3  ;;  %2137 = vadd.xlane.f32.xlu1 %v1903_v57  ;;  %v2637_v19 = vrot.slane %v2216_v50, %v5001_v26 }
 0x218   :  { %v1650_v47 = vadd.f32 %v5293_v9, %v1320_v63  ;;  %v2215_v60 = vadd.f32 %v4990_v62, %v1990_v45  ;;  %v1321_v52 = vadd.f32 %v5060_v20, %v1153_v29  ;;  %v2004_v3 = vpop.xlane.xlu1 %2003  ;;  %v1767_v32 = vmax.f32 %v5307_v49, 0.0 }
 0x219   :  { %v5417_v14 = vadd.f32 %v5293_v9, %v1323_v44  ;;  %v2642_v4 = vrot.slane %v2217_v48, %v5031_v15  ;;  %v1901_v12 = vmul.f32 %v5075_v11, %v1766_v27  ;;  %v2647_v13 = vrot.slane %v2218_v53, %v5041_v38 }
 0x21a   :  { %v2633_v41 = vrot.slane %v2215_v60, %v4997_v37  ;;  %v5422_v6 = vadd.f32 %v5293_v9, %v1321_v52  ;;  %2155 = vadd.xlane.f32.xlu0 %v1912_v55  ;;  %v1780_v58 = vmax.f32 %v1652_v23, 0.0  ;;  %v1910_v50 = vmul.f32 %v5075_v11, %v1775_v39 }
 0x21b   :  { %v2002_v46 = vpop.xlane.xlu0 %2001  ;;  %v2652_v10 = vrot.slane %v2219_v30, %v5004_v2  ;;  %2133 = vadd.xlane.f32.xlu1 %v1901_v12  ;;  %v1904_v48 = vmul.f32 %v5075_v11, %v1769_v16  ;;  %v1778_v27 = vmax.f32 %v1650_v47, 0.0  ;;  %v2222_v25 = vadd.f32 %v4990_v62, %v2004_v3 }
 0x21c   :  { %v2638_v57 = vsel %vm2451_vm1, %v2637_v19, %v2633_v41  ;;  %v3950_v28 = vpop.f32.mrb[120].mxu0  ;;  %v2010_v53 = vpop.xlane.xlu1 %2009  ;;  %v2221_v1 = vadd.f32 %v4990_v62, %v2002_v46  ;;  %v1915_v16 = vmul.f32 %v5075_v11, %v1780_v58  ;;  %v1772_v19 = vmax.f32 %v5331_v5, 0.0 }
 0x21d   :  { %v2643_v8 = vsel %vm2458_vm2, %v2642_v4, %v2638_v57  ;;  %v1326_v49 = vadd.f32 %v5060_v20, %v3950_v28  ;;  %v1166_v7 = vpop.f32.mrb[121].mxu0  ;;  %v1781_v57 = vmax.f32 %v5417_v14, 0.0  ;;  %v2667_v28 = vrot.slane %v2222_v25, %v5093_v43 }
 0x21e   :  { %v1324_v63 = vadd.f32 %v5060_v20, %v1166_v7  ;;  %2151 = vadd.xlane.f32.xlu0 %v1910_v50  ;;  %v3951_v59 = vpop.f32.mrb[122].mxu0  ;;  %v2648_v39 = vsel %vm2465_vm3, %v2647_v13, %v2643_v8  ;;  %v2662_v12 = vrot.slane %v2221_v1, %v5049_v61  ;;  %v1902_v13 = vmul.f32 %v5075_v11, %v1767_v32 }
 0x21f   :  { %v5439_v23 = vadd.f32 %v5293_v9, %v1326_v49  ;;  %v1327_v44 = vadd.f32 %v5060_v20, %v3951_v59  ;;  %v2653_v45 = vsel %vm2472_vm4, %v2652_v10, %v2648_v39  ;;  %v2000_v29 = vpop.xlane.xlu0 %1999  ;;  %v1169_v55 = vpop.f32.mrb[123].mxu0  ;;  %2139 = vadd.xlane.f32.xlu1 %v1904_v48  ;;  %v1913_v10 = vmul.f32 %v5075_v11, %v1778_v27 }
 0x220   :  { %v5444_v47 = vadd.f32 %v5293_v9, %v1324_v63  ;;  %v2220_v60 = vadd.f32 %v4990_v62, %v2000_v29  ;;  %v1325_v52 = vadd.f32 %v5060_v20, %v1169_v55  ;;  %v2006_v3 = vpop.xlane.xlu1 %2005  ;;  %v1907_v25 = vmul.f32 %v5075_v11, %v1772_v19 }
 0x221   :  { %v5450_v30 = vadd.f32 %v5293_v9, %v1327_v44  ;;  %v2223_v46 = vadd.f32 %v4990_v62, %v2006_v3  ;;  %v1774_v39 = vmax.f32 %v5375_v21, 0.0  ;;  %v1779_v55 = vmax.f32 %v5422_v6, 0.0 }
 0x222   :  { %v2657_v41 = vrot.slane %v2220_v60, %v5034_v35  ;;  %v5455_v4 = vadd.f32 %v5293_v9, %v1325_v52  ;;  %2161 = vadd.xlane.f32.xlu0 %v1915_v16  ;;  %v1916_v16 = vmul.f32 %v5075_v11, %v1781_v57  ;;  %v2225_v19 = vadd.f32 %v4990_v62, %v2010_v53 }
 0x223   :  { %v5460_v58 = vpop.xlane.xlu0 %2025  ;;  %v2672_v49 = vrot.slane %v2223_v46, %v5052_v18  ;;  %2135 = vadd.xlane.f32.xlu1 %v1902_v13  ;;  %v1909_v13 = vmul.f32 %v5075_v11, %v1774_v39  ;;  %v1784_v57 = vmax.f32 %v5439_v23, 0.0  ;;  %v1782_v23 = vmax.f32 %v5444_v47, 0.0 }
 0x224   :  { %v2658_v5 = vsel %vm2479_vm5, %v2657_v41, %v2653_v45  ;;  %v3954_v50 = vpop.f32.mrb[124].mxu0  ;;  %v2012_v63 = vpop.xlane.xlu1 %2011  ;;  %v2682_v53 = vrot.slane %v2225_v19, %v5044_v40  ;;  %v1783_v39 = vmax.f32 %v5455_v4, 0.0  ;;  %vm3106_vm0 = vcmask 1042434  }
 0x225   :  { %v2663_v8 = vsel %vm2486_vm6, %v2662_v12, %v2658_v5  ;;  %v1330_v7 = vadd.f32 %v5060_v20, %v3954_v50  ;;  %v1182_v48 = vpop.f32.mrb[125].mxu0  ;;  %v1773_v12 = vmax.f32 %v5345_v22, 0.0  ;;  %v2226_v46 = vadd.f32 %v4990_v62, %v2012_v63 }
 0x226   :  { %v2668_v32 = vsel %vm2493_vm7, %v2667_v28, %v2663_v8  ;;  %v1328_v14 = vadd.f32 %v5060_v20, %v1182_v48  ;;  %2157 = vadd.xlane.f32.xlu0 %v1913_v10  ;;  %v3955_v59 = vpop.f32.mrb[126].mxu0  ;;  %v1914_v28 = vmul.f32 %v5075_v11, %v1779_v55  ;;  %v1785_v22 = vmax.f32 %v5450_v30, 0.0 }
 0x227   :  { %v2673_v27 = vsel %vm2500_vm8, %v2672_v49, %v2668_v32  ;;  %v5475_v1 = vadd.f32 %v5293_v9, %v1330_v7  ;;  %v1331_v44 = vadd.f32 %v5060_v20, %v3955_v59  ;;  %v5478_v45 = vpop.xlane.xlu0 %2027  ;;  %v1185_v29 = vpop.f32.mrb[127].mxu0  ;;  %2145 = vadd.xlane.f32.xlu1 %v1907_v25  ;;  %v2687_v50 = vrot.slane %v2226_v46, %v5097_v33 }
 0x228   :  { %v1658_v60 = vadd.f32 %v5293_v9, %v1328_v14  ;;  %v1329_v52 = vadd.f32 %v5060_v20, %v1185_v29  ;;  %v2008_v41 = vpop.xlane.xlu1 %2007  ;;  %v1908_v8 = vmul.f32 %v5075_v11, %v1773_v12  ;;  %v1919_v48 = vmul.f32 %v5075_v11, %v1784_v57 }
 0x229   :  { %v1661_v21 = vadd.f32 %v5293_v9, %v1331_v44  ;;  %v2224_v6 = vadd.f32 %v4990_v62, %v2008_v41  ;;  %v1920_v25 = vmul.f32 %v5075_v11, %v1785_v22  ;;  %v1918_v19 = vmul.f32 %v5075_v11, %v1783_v39 }
 0x22a   :  { %v1659_v3 = vadd.f32 %v5293_v9, %v1329_v52  ;;  %2163 = vadd.xlane.f32.xlu0 %v1916_v16  ;;  %v1786_v30 = vmax.f32 %v1658_v60, 0.0  ;;  %v2234_v22 = vadd.f32 %v4990_v62, %v5478_v45 }
 0x22b   :  { %v2024_v20 = vpop.xlane.xlu0 %2023  ;;  %v2677_v5 = vrot.slane %v2224_v6, %v5104_v56  ;;  %2149 = vadd.xlane.f32.xlu1 %v1909_v13  ;;  %v1789_v29 = vmax.f32 %v1661_v21, 0.0  ;;  %v1788_v13 = vmax.f32 %v5475_v1, 0.0 }
 0x22c   :  { %v2018_v9 = vpop.xlane.xlu1 %2017  ;;  %v1921_v52 = vmul.f32 %v5075_v11, %v1786_v30  ;;  %v1787_v16 = vmax.f32 %v1659_v3, 0.0  ;;  %v2232_v3 = vadd.f32 %v4990_v62, %v2024_v20  ;;  %v2726_v30 = vrot.slane %v2234_v22, %v5041_v38 }
 0x22d   :  { %v2678_v10 = vsel %vm2507_vm9, %v2677_v5, %v2673_v27  ;;  %v1917_v27 = vmul.f32 %v5075_v11, %v1782_v23  ;;  %v2229_v41 = vadd.f32 %v4990_v62, %v2018_v9  ;;  %v1924_v6 = vmul.f32 %v5075_v11, %v1789_v29 }
 0x22e   :  { %2159 = vadd.xlane.f32.xlu0 %v1914_v28  ;;  %v2683_v7 = vsel %vm2514_vm10, %v2682_v53, %v2678_v10  ;;  %v1922_v57 = vmul.f32 %v5075_v11, %v1787_v16  ;;  %v2233_v5 = vadd.f32 %v4990_v62, %v5460_v58  ;;  %v1923_v23 = vmul.f32 %v5075_v11, %v1788_v13 }
 0x22f   :  { %v5499_v49 = vpop.xlane.xlu0 %2033  ;;  %2147 = vadd.xlane.f32.xlu1 %v1908_v8  ;;  %v2688_v32 = vsel %vm2521_vm11, %v2687_v50, %v2683_v7  ;;  %v2702_v53 = vrot.slane %v2229_v41, %v5215_v17  ;;  %v2716_v58 = vrot.slane %v2232_v3, %v5001_v26 }
 0x230   :  { %v2014_v63 = vpop.xlane.xlu1 %2013 }
 0x231   :  { %v2227_v14 = vadd.f32 %v4990_v62, %v2014_v63 }
 0x232   :  { %2169 = vadd.xlane.f32.xlu0 %v1919_v48 }
 0x233   :  { %v2036_v59 = vpop.xlane.xlu0 %2035  ;;  %v2692_v47 = vrot.slane %v2227_v14, %v5170_v54  ;;  %2171 = vadd.xlane.f32.xlu1 %v1920_v25 }
 0x234   :  { %v2020_v44 = vpop.xlane.xlu1 %2019 }
 0x235   :  { %v2693_v55 = vsel %vm2528_vm12, %v2692_v47, %v2688_v32  ;;  %v2230_v12 = vadd.f32 %v4990_v62, %v2020_v44  ;;  %v2721_v32 = vrot.slane %v2233_v5, %v5031_v15  ;;  %v2237_v44 = vadd.f32 %v4990_v62, %v5499_v49 }
 0x236   :  { %2165 = vadd.xlane.f32.xlu0 %v1917_v27 }
 0x237   :  { %v2042_v60 = vpop.xlane.xlu0 %2041  ;;  %2173 = vadd.xlane.f32.xlu1 %v1921_v52  ;;  %v2707_v1 = vrot.slane %v2230_v12, %v5223_v42  ;;  %v2741_v12 = vrot.slane %v2237_v44, %v5049_v61 }
 0x238   :  { %v2016_v4 = vpop.xlane.xlu1 %2015 }
 0x239   :  { %v2228_v46 = vadd.f32 %v4990_v62, %v2016_v4 }
 0x23a   :  { %2167 = vadd.xlane.f32.xlu0 %v1918_v19 }
 0x23b   :  { %v2038_v21 = vpop.xlane.xlu0 %2037  ;;  %v2697_v28 = vrot.slane %v2228_v46, %v5212_v31  ;;  %2179 = vadd.xlane.f32.xlu1 %v1924_v6  ;;  %v2241_v46 = vadd.f32 %v4990_v62, %v2042_v60 }
 0x23c   :  { %v2022_v9 = vpop.xlane.xlu1 %2021  ;;  %v2239_v19 = vadd.f32 %v4990_v62, %v2038_v21 }
 0x23d   :  { %v2698_v50 = vsel %vm2535_vm13, %v2697_v28, %v2693_v55  ;;  %v2231_v20 = vadd.f32 %v4990_v62, %v2022_v9  ;;  %v2761_v60 = vrot.slane %v2241_v46, %v5044_v40 }
 0x23e   :  { %2175 = vadd.xlane.f32.xlu0 %v1922_v57  ;;  %v2703_v8 = vsel %vm2542_vm14, %v2702_v53, %v2698_v50  ;;  %v2751_v3 = vrot.slane %v2239_v19, %v5052_v18 }
 0x23f   :  { %v2044_v10 = vpop.xlane.xlu0 %2043  ;;  %v2708_v7 = vsel %vm2549_vm15, %v2707_v1, %v2703_v8  ;;  %v2712_v48 = vrot.slane %v2231_v20, %v4997_v37 }
 0x240   :  { %v3107_v45 = vsel %vm3106_vm0, %v2708_v7, %v5409_v51  ;;  %v2030_v63 = vpop.xlane.xlu1 %2029  ;;  %v2238_v51 = vadd.f32 %v4990_v62, %v2036_v59  ;;  %v2242_v59 = vadd.f32 %v4990_v62, %v2044_v10  ;;  %vm3108_vm0 = vcmask 1043459  }
 0x241   :  { %v2717_v14 = vsel %vm2451_vm1, %v2716_v58, %v2712_v48  ;;  %v2235_v25 = vadd.f32 %v4990_v62, %v2030_v63 }
 0x242   :  { %2177 = vadd.xlane.f32.xlu0 %v1923_v23  ;;  %v2722_v11 = vsel %vm2458_vm2, %v2721_v32, %v2717_v14  ;;  %v2746_v49 = vrot.slane %v2238_v51, %v5093_v43  ;;  %v2766_v50 = vrot.slane %v2242_v59, %v5097_v33 }
 0x243   :  { %v2040_v39 = vpop.xlane.xlu0 %2039  ;;  %v2727_v27 = vsel %vm2465_vm3, %v2726_v30, %v2722_v11  ;;  %v2731_v47 = vrot.slane %v2235_v25, %v5004_v2 }
 0x244   :  { %v2032_v29 = vpop.xlane.xlu1 %2031  ;;  %v2240_v4 = vadd.f32 %v4990_v62, %v2040_v39 }
 0x245   :  { %v2732_v55 = vsel %vm2472_vm4, %v2731_v47, %v2727_v27  ;;  %v2236_v52 = vadd.f32 %v4990_v62, %v2032_v29 }
 0x246   :  { %v2756_v53 = vrot.slane %v2240_v4, %v5104_v56 }
 0x247   :  { %v2050_v16 = vpop.xlane.xlu0 %2049  ;;  %v2736_v41 = vrot.slane %v2236_v52, %v5034_v35 }
 0x248   :  { %v2052_v6 = vpop.xlane.xlu1 %2051  ;;  %v2245_v10 = vadd.f32 %v4990_v62, %v2050_v16 }
 0x249   :  { %v2737_v13 = vsel %vm2479_vm5, %v2736_v41, %v2732_v55  ;;  %v2246_v58 = vadd.f32 %v4990_v62, %v2052_v6 }
 0x24a   :  { %v2742_v21 = vsel %vm2486_vm6, %v2741_v12, %v2737_v13  ;;  %v2781_v14 = vrot.slane %v2245_v10, %v5215_v17 }
 0x24b   :  { %v2046_v57 = vpop.xlane.xlu0 %2045  ;;  %v2747_v5 = vsel %vm2493_vm7, %v2746_v49, %v2742_v21  ;;  %v2786_v39 = vrot.slane %v2246_v58, %v5223_v42 }
 0x24c   :  { %v2243_v28 = vadd.f32 %v4990_v62, %v2046_v57  ;;  %v2752_v9 = vsel %vm2500_vm8, %v2751_v3, %v2747_v5  ;;  %v2058_v1 = vpop.xlane.xlu1 %2057 }
 0x24d   :  { %v2757_v20 = vsel %vm2507_vm9, %v2756_v53, %v2752_v9  ;;  %v2249_v51 = vadd.f32 %v4990_v62, %v2058_v1 }
 0x24e   :  { %v2771_v22 = vrot.slane %v2243_v28, %v5170_v54  ;;  %v2762_v23 = vsel %vm2514_vm10, %v2761_v60, %v2757_v20 }
 0x24f   :  { %v2048_v8 = vpop.xlane.xlu0 %2047  ;;  %v2767_v48 = vsel %vm2521_vm11, %v2766_v50, %v2762_v23  ;;  %v2800_v46 = vrot.slane %v2249_v51, %v5031_v15 }
 0x250   :  { %v2244_v7 = vadd.f32 %v4990_v62, %v2048_v8  ;;  %v2772_v32 = vsel %vm2528_vm12, %v2771_v22, %v2767_v48  ;;  %v2054_v30 = vpop.xlane.xlu1 %2053 }
 0x251   :  { %v2247_v44 = vadd.f32 %v4990_v62, %v2054_v30 }
 0x252   :  { %v2776_v63 = vrot.slane %v2244_v7, %v5212_v31 }
 0x253   :  { %v2060_v25 = vpop.xlane.xlu0 %2059  ;;  %v2791_v41 = vrot.slane %v2247_v44, %v4997_v37 }
 0x254   :  { %v2777_v11 = vsel %vm2535_vm13, %v2776_v63, %v2772_v32  ;;  %v2066_v29 = vpop.xlane.xlu1 %2065  ;;  %v2250_v16 = vadd.f32 %v4990_v62, %v2060_v25 }
 0x255   :  { %v2782_v27 = vsel %vm2542_vm14, %v2781_v14, %v2777_v11  ;;  %v2253_v57 = vadd.f32 %v4990_v62, %v2066_v29 }
 0x256   :  { %v2787_v47 = vsel %vm2549_vm15, %v2786_v39, %v2782_v27  ;;  %v2805_v49 = vrot.slane %v2250_v16, %v5041_v38 }
 0x257   :  { %v2056_v55 = vpop.xlane.xlu0 %2055  ;;  %v5579_v52 = vsel %vm3108_vm0, %v2787_v47, %v3107_v45  ;;  %v2820_v1 = vrot.slane %v2253_v57, %v5049_v61  ;;  %vm3110_vm0 = vcmask 1044484  }
 0x258   :  { %v2248_v19 = vadd.f32 %v4990_v62, %v2056_v55  ;;  %v2068_v12 = vpop.xlane.xlu1 %2067 }
 0x259   :  { %v2254_v5 = vadd.f32 %v4990_v62, %v2068_v12 }
 0x25a   :  { %v2795_v4 = vrot.slane %v2248_v19, %v5001_v26 }
 0x25b   :  { %v2062_v6 = vpop.xlane.xlu0 %2061  ;;  %v2825_v20 = vrot.slane %v2254_v5, %v5093_v43 }
 0x25c   :  { %v2796_v59 = vsel %vm2451_vm1, %v2795_v4, %v2791_v41  ;;  %v2251_v13 = vadd.f32 %v4990_v62, %v2062_v6  ;;  %v2064_v28 = vpop.xlane.xlu1 %2063 }
 0x25d   :  { %v2801_v45 = vsel %vm2458_vm2, %v2800_v46, %v2796_v59  ;;  %v2252_v53 = vadd.f32 %v4990_v62, %v2064_v28 }
 0x25e   :  { %v2806_v3 = vsel %vm2465_vm3, %v2805_v49, %v2801_v45  ;;  %v2810_v21 = vrot.slane %v2251_v13, %v5004_v2 }
 0x25f   :  { %v2082_v60 = vpop.xlane.xlu0 %2081  ;;  %v2815_v22 = vrot.slane %v2252_v53, %v5034_v35 }
 0x260   :  { %v2811_v9 = vsel %vm2472_vm4, %v2810_v21, %v2806_v3  ;;  %v2074_v50 = vpop.xlane.xlu1 %2073  ;;  %v2261_v49 = vadd.f32 %v4990_v62, %v2082_v60 }
 0x261   :  { %v2816_v10 = vsel %vm2479_vm5, %v2815_v22, %v2811_v9  ;;  %v2257_v39 = vadd.f32 %v4990_v62, %v2074_v50 }
 0x262   :  { %v2821_v23 = vsel %vm2486_vm6, %v2820_v1, %v2816_v10  ;;  %v2860_v28 = vrot.slane %v2261_v49, %v5215_v17 }
 0x263   :  { %v2084_v8 = vpop.xlane.xlu0 %2083  ;;  %v2826_v58 = vsel %vm2493_vm7, %v2825_v20, %v2821_v23  ;;  %v2840_v51 = vrot.slane %v2257_v39, %v5044_v40 }
 0x264   :  { %v2070_v7 = vpop.xlane.xlu1 %2069  ;;  %v2262_v13 = vadd.f32 %v4990_v62, %v2084_v8 }
 0x265   :  { %v2255_v48 = vadd.f32 %v4990_v62, %v2070_v7 }
 0x266   :  { %v2865_v53 = vrot.slane %v2262_v13, %v5223_v42 }
 0x267   :  { %v2086_v32 = vpop.xlane.xlu0 %2085  ;;  %v2830_v63 = vrot.slane %v2255_v48, %v5052_v18 }
 0x268   :  { %v2076_v30 = vpop.xlane.xlu1 %2075  ;;  %v2263_v8 = vadd.f32 %v4990_v62, %v2086_v32 }
 0x269   :  { %v2831_v14 = vsel %vm2500_vm8, %v2830_v63, %v2826_v58  ;;  %v2258_v27 = vadd.f32 %v4990_v62, %v2076_v30 }
 0x26b   :  { %v2098_v25 = vpop.xlane.xlu0 %2097  ;;  %v2845_v16 = vrot.slane %v2258_v27, %v5097_v33 }
 0x26c   :  { %v2072_v11 = vpop.xlane.xlu1 %2071 }
 0x26d   :  { %v2256_v47 = vadd.f32 %v4990_v62, %v2072_v11 }
 0x26f   :  { %v2094_v44 = vpop.xlane.xlu0 %2093  ;;  %v2835_v29 = vrot.slane %v2256_v47, %v5104_v56 }
 0x270   :  { %v2078_v55 = vpop.xlane.xlu1 %2077  ;;  %v2267_v30 = vadd.f32 %v4990_v62, %v2094_v44 }
 0x271   :  { %v2836_v19 = vsel %vm2507_vm9, %v2835_v29, %v2831_v14  ;;  %v2259_v41 = vadd.f32 %v4990_v62, %v2078_v55  ;;  %v2870_v14 = vrot.slane %v2263_v8, %v4997_v37 }
 0x272   :  { %v2841_v12 = vsel %vm2514_vm10, %v2840_v51, %v2836_v19  ;;  %v2889_v44 = vrot.slane %v2267_v30, %v5004_v2 }
 0x273   :  { %v2100_v4 = vpop.xlane.xlu0 %2099  ;;  %v2846_v46 = vsel %vm2521_vm11, %v2845_v16, %v2841_v12  ;;  %v2850_v6 = vrot.slane %v2259_v41, %v5170_v54 }
 0x274   :  { %v2080_v59 = vpop.xlane.xlu1 %2079  ;;  %v2270_v47 = vadd.f32 %v4990_v62, %v2100_v4 }
 0x275   :  { %v2851_v45 = vsel %vm2528_vm12, %v2850_v6, %v2846_v46  ;;  %v2260_v57 = vadd.f32 %v4990_v62, %v2080_v59 }
 0x276   :  { %v2904_v59 = vrot.slane %v2270_v47, %v5093_v43 }
 0x277   :  { %v2096_v3 = vpop.xlane.xlu0 %2095  ;;  %v2855_v21 = vrot.slane %v2260_v57, %v5212_v31 }
 0x278   :  { %v2090_v5 = vpop.xlane.xlu1 %2089  ;;  %v2268_v39 = vadd.f32 %v4990_v62, %v2096_v3 }
 0x279   :  { %v2856_v9 = vsel %vm2535_vm13, %v2855_v21, %v2851_v45  ;;  %v2265_v23 = vadd.f32 %v4990_v62, %v2090_v5 }
 0x27a   :  { %v2861_v60 = vsel %vm2542_vm14, %v2860_v28, %v2856_v9 }
 0x27b   :  { %v2106_v22 = vpop.xlane.xlu0 %2105  ;;  %v2866_v1 = vsel %vm2549_vm15, %v2865_v53, %v2861_v60  ;;  %v2879_v32 = vrot.slane %v2265_v23, %v5031_v15 }
 0x27c   :  { %v2092_v50 = vpop.xlane.xlu1 %2091  ;;  %v3111_v20 = vsel %vm3110_vm0, %v2866_v1, %v5579_v52  ;;  %v2269_v52 = vadd.f32 %v4990_v62, %v2098_v25  ;;  %v2894_v25 = vrot.slane %v2268_v39, %v5034_v35  ;;  %v2273_v4 = vadd.f32 %v4990_v62, %v2106_v22 }
 0x27d   :  { %v2266_v7 = vadd.f32 %v4990_v62, %v2092_v50  ;;  %vm3112_vm0 = vcmask 1045509  }
 0x27e   :  { %v2899_v46 = vrot.slane %v2269_v52, %v5049_v61  ;;  %v2919_v22 = vrot.slane %v2273_v4, %v5044_v40 }
 0x27f   :  { %v2102_v10 = vpop.xlane.xlu0 %2101  ;;  %v2884_v29 = vrot.slane %v2266_v7, %v5041_v38 }
 0x280   :  { %v2088_v58 = vpop.xlane.xlu1 %2087  ;;  %v2271_v19 = vadd.f32 %v4990_v62, %v2102_v10 }
 0x281   :  { %v2264_v48 = vadd.f32 %v4990_v62, %v2088_v58 }
 0x282   :  { %v2909_v28 = vrot.slane %v2271_v19, %v5052_v18 }
 0x283   :  { %v2108_v63 = vpop.xlane.xlu0 %2107  ;;  %v2874_v11 = vrot.slane %v2264_v48, %v5001_v26 }
 0x284   :  { %v2114_v27 = vpop.xlane.xlu1 %2113  ;;  %v2274_v45 = vadd.f32 %v4990_v62, %v2108_v63 }
 0x285   :  { %v2875_v51 = vsel %vm2451_vm1, %v2874_v11, %v2870_v14  ;;  %v2277_v1 = vadd.f32 %v4990_v62, %v2114_v27 }
 0x286   :  { %v2880_v16 = vsel %vm2458_vm2, %v2879_v32, %v2875_v51  ;;  %v2924_v8 = vrot.slane %v2274_v45, %v5097_v33 }
 0x287   :  { %v2104_v55 = vpop.xlane.xlu0 %2103  ;;  %v2885_v12 = vsel %vm2465_vm3, %v2884_v29, %v2880_v16  ;;  %v2939_v14 = vrot.slane %v2277_v1, %v5215_v17 }
 0x288   :  { %v2272_v41 = vadd.f32 %v4990_v62, %v2104_v55  ;;  %v2890_v6 = vsel %vm2472_vm4, %v2889_v44, %v2885_v12  ;;  %v2112_v49 = vpop.xlane.xlu1 %2111 }
 0x289   :  { %v2895_v13 = vsel %vm2479_vm5, %v2894_v25, %v2890_v6  ;;  %v2276_v9 = vadd.f32 %v4990_v62, %v2112_v49 }
 0x28a   :  { %v2914_v57 = vrot.slane %v2272_v41, %v5104_v56  ;;  %v2900_v21 = vsel %vm2486_vm6, %v2899_v46, %v2895_v13 }
 0x28b   :  { %v2110_v3 = vpop.xlane.xlu0 %2109  ;;  %v2905_v53 = vsel %vm2493_vm7, %v2904_v59, %v2900_v21  ;;  %v2934_v63 = vrot.slane %v2276_v9, %v5212_v31 }
 0x28c   :  { %v2275_v5 = vadd.f32 %v4990_v62, %v2110_v3  ;;  %v2910_v60 = vsel %vm2500_vm8, %v2909_v28, %v2905_v53  ;;  %v2124_v10 = vpop.xlane.xlu1 %2123 }
 0x28d   :  { %v2915_v23 = vsel %vm2507_vm9, %v2914_v57, %v2910_v60 }
 0x28e   :  { %v2929_v50 = vrot.slane %v2275_v5, %v5170_v54  ;;  %v2920_v7 = vsel %vm2514_vm10, %v2919_v22, %v2915_v23  ;;  %v2282_v5 = vadd.f32 %v4990_v62, %v2124_v10 }
 0x28f   :  { %v2116_v58 = vpop.xlane.xlu0 %2115  ;;  %v2925_v30 = vsel %vm2521_vm11, %v2924_v8, %v2920_v7 }
 0x290   :  { %v2278_v48 = vadd.f32 %v4990_v62, %v2116_v58  ;;  %v2930_v39 = vsel %vm2528_vm12, %v2929_v50, %v2925_v30  ;;  %v2120_v52 = vpop.xlane.xlu1 %2119  ;;  %v2963_v23 = vrot.slane %v2282_v5, %v5041_v38 }
 0x291   :  { %v2935_v32 = vsel %vm2535_vm13, %v2934_v63, %v2930_v39  ;;  %v2280_v59 = vadd.f32 %v4990_v62, %v2120_v52 }
 0x292   :  { %v2944_v11 = vrot.slane %v2278_v48, %v5223_v42  ;;  %v2940_v47 = vsel %vm2542_vm14, %v2939_v14, %v2935_v32 }
 0x293   :  { %v2122_v27 = vpop.xlane.xlu0 %2121  ;;  %v2953_v3 = vrot.slane %v2280_v59, %v5001_v26 }
 0x294   :  { %v2945_v29 = vsel %vm2549_vm15, %v2944_v11, %v2940_v47  ;;  %v2130_v51 = vpop.xlane.xlu1 %2129  ;;  %v2281_v57 = vadd.f32 %v4990_v62, %v2122_v27 }
 0x295   :  { %v5674_v55 = vsel %vm3112_vm0, %v2945_v29, %v3111_v20  ;;  %v2285_v10 = vadd.f32 %v4990_v62, %v2130_v51 }
 0x296   :  { %v2958_v9 = vrot.slane %v2281_v57, %v5031_v15 }
 0x297   :  { %v2118_v44 = vpop.xlane.xlu0 %2117  ;;  %v2978_v51 = vrot.slane %v2285_v10, %v5049_v61 }
 0x298   :  { %v2126_v16 = vpop.xlane.xlu1 %2125  ;;  %v2279_v49 = vadd.f32 %v4990_v62, %v2118_v44 }
 0x299   :  { %v2283_v50 = vadd.f32 %v4990_v62, %v2126_v16 }
 0x29a   :  { %v2949_v20 = vrot.slane %v2279_v49, %v4997_v37 }
 0x29b   :  { %v5676_v19 = vpop.xlane.xlu0 %2141  ;;  %v2968_v63 = vrot.slane %v2283_v50, %v5004_v2 }
 0x29c   :  { %v2132_v41 = vpop.xlane.xlu1 %2131  ;;  %v2954_v53 = vsel %vm2451_vm1, %v2953_v3, %v2949_v20 }
 0x29d   :  { %v2959_v1 = vsel %vm2458_vm2, %v2958_v9, %v2954_v53  ;;  %v2286_v52 = vadd.f32 %v4990_v62, %v2132_v41 }
 0x29e   :  { %v2964_v58 = vsel %vm2465_vm3, %v2963_v23, %v2959_v1 }
 0x29f   :  { %v5678_v25 = vpop.xlane.xlu0 %2143  ;;  %v2969_v14 = vsel %vm2472_vm4, %v2968_v63, %v2964_v58  ;;  %v2983_v20 = vrot.slane %v2286_v52, %v5093_v43 }
 0x2a0   :  { %v2128_v12 = vpop.xlane.xlu1 %2127  ;;  %v2292_v52 = vadd.f32 %v4990_v62, %v5678_v25 }
 0x2a1   :  { %v2284_v22 = vadd.f32 %v4990_v62, %v2128_v12 }
 0x2a3   :  { %v2154_v46 = vpop.xlane.xlu0 %2153  ;;  %v2973_v7 = vrot.slane %v2284_v22, %v5034_v35 }
 0x2a4   :  { %v2138_v4 = vpop.xlane.xlu1 %2137  ;;  %v2297_v27 = vadd.f32 %v4990_v62, %v2154_v46 }
 0x2a5   :  { %v2974_v32 = vsel %vm2479_vm5, %v2973_v7, %v2969_v14  ;;  %v2289_v5 = vadd.f32 %v4990_v62, %v2138_v4 }
 0x2a6   :  { %v2979_v41 = vsel %vm2486_vm6, %v2978_v51, %v2974_v32  ;;  %v3037_v57 = vrot.slane %v2297_v27, %v5031_v15 }
 0x2a7   :  { %v2156_v6 = vpop.xlane.xlu0 %2155  ;;  %v2998_v7 = vrot.slane %v2289_v5, %v5044_v40 }
 0x2a8   :  { %v2134_v13 = vpop.xlane.xlu1 %2133  ;;  %v2298_v44 = vadd.f32 %v4990_v62, %v2156_v6 }
 0x2a9   :  { %v2287_v39 = vadd.f32 %v4990_v62, %v2134_v13 }
 0x2aa   :  { %v3042_v53 = vrot.slane %v2298_v44, %v5041_v38 }
 0x2ab   :  { %v2152_v45 = vpop.xlane.xlu0 %2151  ;;  %v2988_v13 = vrot.slane %v2287_v39, %v5052_v18 }
 0x2ac   :  { %v2140_v21 = vpop.xlane.xlu1 %2139  ;;  %v2296_v11 = vadd.f32 %v4990_v62, %v2152_v45 }
 0x2ad   :  { %v2290_v4 = vadd.f32 %v4990_v62, %v2140_v21 }
 0x2ae   :  { %v3032_v46 = vrot.slane %v2296_v11, %v5001_v26 }
 0x2af   :  { %v2162_v28 = vpop.xlane.xlu0 %2161  ;;  %v3003_v39 = vrot.slane %v2290_v4, %v5097_v33 }
 0x2b0   :  { %v2136_v60 = vpop.xlane.xlu1 %2135  ;;  %v2301_v50 = vadd.f32 %v4990_v62, %v2162_v28  ;;  %v2291_v28 = vadd.f32 %v4990_v62, %v5676_v19 }
 0x2b1   :  { %v2288_v47 = vadd.f32 %v4990_v62, %v2136_v60  ;;  %v2984_v60 = vsel %vm2493_vm7, %v2983_v20, %v2979_v41 }
 0x2b2   :  { %v2989_v15 = vsel %vm2500_vm8, %v2988_v13, %v2984_v60  ;;  %v3057_v21 = vrot.slane %v2301_v50, %v5049_v61  ;;  %v3008_v44 = vrot.slane %v2291_v28, %v5170_v54 }
 0x2b3   :  { %v2158_v8 = vpop.xlane.xlu0 %2157  ;;  %v2993_v6 = vrot.slane %v2288_v47, %v5104_v56 }
 0x2b4   :  { %v2146_v48 = vpop.xlane.xlu1 %2145  ;;  %v2299_v49 = vadd.f32 %v4990_v62, %v2158_v8 }
 0x2b5   :  { %v2994_v38 = vsel %vm2507_vm9, %v2993_v6, %v2989_v15 }
 0x2b6   :  { %v3047_v26 = vrot.slane %v2299_v49, %v5004_v2  ;;  %v2999_v14 = vsel %vm2514_vm10, %v2998_v7, %v2994_v38 }
 0x2b7   :  { %v2164_v30 = vpop.xlane.xlu0 %2163 }
 0x2b8   :  { %v2150_v29 = vpop.xlane.xlu1 %2149  ;;  %v2302_v10 = vadd.f32 %v4990_v62, %v2164_v30 }
 0x2b9   :  { %v2295_v16 = vadd.f32 %v4990_v62, %v2150_v29  ;;  %v3004_v29 = vsel %vm2521_vm11, %v3003_v39, %v2999_v14 }
 0x2ba   :  { %v3062_v19 = vrot.slane %v2302_v10, %v5093_v43 }
 0x2bb   :  { %v2160_v12 = vpop.xlane.xlu0 %2159  ;;  %v3028_v45 = vrot.slane %v2295_v16, %v4997_v37  ;;  %v2293_v16 = vadd.f32 %v4990_v62, %v2146_v48 }
 0x2bc   :  { %v2300_v59 = vadd.f32 %v4990_v62, %v2160_v12  ;;  %v2148_v3 = vpop.xlane.xlu1 %2147 }
 0x2bd   :  { %v3033_v9 = vsel %vm2451_vm1, %v3032_v46, %v3028_v45  ;;  %v2294_v25 = vadd.f32 %v4990_v62, %v2148_v3  ;;  %v3013_v46 = vrot.slane %v2292_v52, %v5212_v31  ;;  %v3018_v6 = vrot.slane %v2293_v16, %v5215_v17  ;;  %v4234_v52 = vld [vmem:[#allocation3 + $0x40] sm:$0xff]   ;;  %v4241_v16 = vld [vmem:[#allocation3 + $0x78] sm:$0xff]  }
 0x2be   :  { %v3038_v37 = vsel %vm2458_vm2, %v3037_v57, %v3033_v9  ;;  %v3052_v1 = vrot.slane %v2300_v59, %v5034_v35  ;;  %v3009_v59 = vsel %vm2528_vm12, %v3008_v44, %v3004_v29  ;;  %vm3114_vm1 = vcmask 1046534   ;;  %v4238_v29 = vld [vmem:[#allocation3 + $0x60] sm:$0xff]  }
 0x2bf   :  { %v2170_v22 = vpop.xlane.xlu0 %2169  ;;  %v3043_v8 = vsel %vm2465_vm3, %v3042_v53, %v3038_v37  ;;  %v3014_v3 = vsel %vm2535_vm13, %v3013_v46, %v3009_v59  ;;  %vm3116_vm2 = vcmask 1047559   ;;  %vm2313_vm3 = vcmp.lt.s32.totalorder %v4963_v34, 8  ;;  %v4245_v59 = vld [vmem:[#allocation3 + $0x98] sm:$0xff]  }
 0x2c0   :  { %v3048_v23 = vsel %vm2472_vm4, %v3047_v26, %v3043_v8  ;;  %v2172_v58 = vpop.xlane.xlu1 %2171  ;;  %v2305_v30 = vadd.f32 %v4990_v62, %v2170_v22  ;;  %v3019_v37 = vsel %vm2542_vm14, %v3018_v6, %v3014_v3  ;;  %vm5903_vm4 = vmmov 0   ;;  %v4252_v6 = vld [vmem:[#allocation3 + $0xd0] sm:$0xff]   ;;  %v4254_v3 = vld [vmem:[#allocation3 + $0xe0] sm:$0xff]  }
 0x2c1   :  { %v3053_v35 = vsel %vm2479_vm5, %v3052_v1, %v3048_v23  ;;  %v2306_v51 = vadd.f32 %v4990_v62, %v2172_v58 }
 0x2c2   :  { %v3058_v32 = vsel %vm2486_vm6, %v3057_v21, %v3053_v35  ;;  %v3077_v43 = vrot.slane %v2305_v30, %v5044_v40  ;;  %v3023_v40 = vrot.slane %v2294_v25, %v5223_v42  ;;  %v4235_v30 = vld [vmem:[#allocation3 + $0x48] sm:$0xff]  }
 0x2c3   :  { %v2166_v2 = vpop.xlane.xlu0 %2165  ;;  %v3063_v12 = vsel %vm2493_vm7, %v3062_v19, %v3058_v32  ;;  %v3082_v45 = vrot.slane %v2306_v51, %v5097_v33  ;;  %v4239_v19 = vld [vmem:[#allocation3 + $0x68] sm:$0xff]  }
 0x2c4   :  { %v2303_v63 = vadd.f32 %v4990_v62, %v2166_v2  ;;  %v2174_v11 = vpop.xlane.xlu1 %2173  ;;  %v3024_v1 = vsel %vm2549_vm15, %v3023_v40, %v3019_v37  ;;  %v4255_v40 = vld [vmem:[#allocation3 + $0xe8] sm:$0xff]   ;;  %v4260_v37 = vld [vmem:[#allocation3 + $0x110] sm:$0xff]  }
 0x2c5   :  { %v2307_v49 = vadd.f32 %v4990_v62, %v2174_v11 }
 0x2c6   :  { %v3067_v27 = vrot.slane %v2303_v63, %v5052_v18 }
 0x2c7   :  { %v2168_v47 = vpop.xlane.xlu0 %2167  ;;  %v3087_v5 = vrot.slane %v2307_v49, %v5170_v54  ;;  %v4243_v49 = vld [vmem:[#allocation3 + $0x88] sm:$0xff]  }
 0x2c8   :  { %v2304_v61 = vadd.f32 %v4990_v62, %v2168_v47  ;;  %v3068_v41 = vsel %vm2500_vm8, %v3067_v27, %v3063_v12  ;;  %v2180_v20 = vpop.xlane.xlu1 %2179  ;;  %v4236_v27 = vld [vmem:[#allocation3 + $0x50] sm:$0xff]   ;;  %v4237_v47 = vld [vmem:[#allocation3 + $0x58] sm:$0xff]   ;;  %v4242_v12 = vld [vmem:[#allocation3 + $0x80] sm:$0xff]  }
 0x2c9   :  { %v2310_v9 = vadd.f32 %v4990_v62, %v2180_v20  ;;  %v4250_v20 = vld [vmem:[#allocation3 + $0xc0] sm:$0xff]  }
 0x2ca   :  { %v3072_v18 = vrot.slane %v2304_v61, %v5104_v56  ;;  %v4240_v61 = vld [vmem:[#allocation3 + $0x70] sm:$0xff]  }
 0x2cb   :  { %v2176_v13 = vpop.xlane.xlu0 %2175  ;;  %v3102_v54 = vrot.slane %v2310_v9, %v5223_v42 }
 0x2cc   :  { %v3073_v48 = vsel %vm2507_vm9, %v3072_v18, %v3068_v41  ;;  %v2308_v57 = vadd.f32 %v4990_v62, %v2176_v13  ;;  %v4244_v18 = vld [vmem:[#allocation3 + $0x90] sm:$0xff]   ;;  %v4247_v41 = vld [vmem:[#allocation3 + $0xa8] sm:$0xff]  }
 0x2cd   :  { %v3078_v56 = vsel %vm2514_vm10, %v3077_v43, %v3073_v48  ;;  %v4246_v43 = vld [vmem:[#allocation3 + $0xa0] sm:$0xff]   ;;  %v4248_v13 = vld [vmem:[#allocation3 + $0xb0] sm:$0xff]  }
 0x2ce   :  { %v3083_v53 = vsel %vm2521_vm11, %v3082_v45, %v3078_v56  ;;  %v3092_v33 = vrot.slane %v2308_v57, %v5212_v31  ;;  %v4249_v45 = vld [vmem:[#allocation3 + $0xb8] sm:$0xff]   ;;  %v4251_v57 = vld [vmem:[#allocation3 + $0xc8] sm:$0xff]  }
 0x2cf   :  { %v2178_v22 = vpop.xlane.xlu0 %2177  ;;  %v3088_v60 = vsel %vm2528_vm12, %v3087_v5, %v3083_v53  ;;  %v4253_v56 = vld [vmem:[#allocation3 + $0xd8] sm:$0xff]   ;;  %v4256_v53 = vld [vmem:[#allocation3 + $0xf0] sm:$0xff]  }
 0x2d0   :  { %v2309_v26 = vadd.f32 %v4990_v62, %v2178_v22  ;;  %v3093_v50 = vsel %vm2535_vm13, %v3092_v33, %v3088_v60  ;;  %v3115_v62 = vsel %vm3114_vm1, %v3024_v1, %v5674_v55  ;;  %v4257_v33 = vld [vmem:[#allocation3 + $0xf8] sm:$0xff]   ;;  %v4258_v60 = vld [vmem:[#allocation3 + $0x100] sm:$0xff]  }
 0x2d1   :  { %v4261_v1 = vld [vmem:[#allocation3 + $0x118] sm:$0xff]  }
 0x2d2   :  { %v3097_v15 = vrot.slane %v2309_v26, %v5215_v17  ;;  %v4259_v26 = vld [vmem:[#allocation3 + $0x108] sm:$0xff]  }
 0x2d4   :  { %v3098_v8 = vsel %vm2542_vm14, %v3097_v15, %v3093_v50  ;;  %v4262_v15 = vld [vmem:[#allocation3 + $0x120] sm:$0xff]  }
 0x2d5   :  { %v3103_v31 = vsel %vm2549_vm15, %v3102_v54, %v3098_v8  ;;  %v4263_v54 = vld [vmem:[#allocation3 + $0x128] sm:$0xff]   ;;  %v4264_v8 = vld [vmem:[#allocation3 + $0x130] sm:$0xff]  }
 0x2d6   :  { %v3117_v4 = vsel %vm3116_vm2, %v3103_v31, %v3115_v62  ;;  %v4265_v62 = vld [vmem:[#allocation3 + $0x138] sm:$0xff]  }
 0x2d7   :  { %v3119_v38 = vsel %vm2313_vm3, %v3117_v4, -1e+30 }
 0x2d8   :  { %3120 = vmax.xlane.f32.xlu0 %v3119_v38 }
 0x365   :  { %v3121_v23 = vpop.xlane.xlu0 %3120 }
 0x366   :  { %v3122_v58 = vsub.f32 %v3119_v38, %v3121_v23  ;;  %v4266_v38 = vld [vmem:[#allocation3 + $0x140] sm:$0xff]   ;;  %v4267_v23 = vld [vmem:[#allocation3 + $0x148] sm:$0xff]  }
 0x368   :  { %v3123_v17 = vmul.f32 1.442695, %v3122_v58  ;;  %v4268_v58 = vld [vmem:[#allocation3 + $0x150] sm:$0xff]  }
 0x36a   :  { %4228 = vpow2.f32 %v3123_v17  ;;  %v4269_v17 = vld [vmem:[#allocation3 + $0x158] sm:$0xff]  }
 0x374   :  { %v4229_v7 = vpop.eup %4228 }
 0x375   :  { %3125 = vadd.xlane.f32.xlu1 %v4229_v7 }
 0x402   :  { %v3126_v42 = vpop.xlane.xlu1 %3125 }
 0x403   :  { %4230 = vrcp.f32 %v3126_v42  ;;  %v4271_v42 = vld [vmem:[#allocation3 + $0x168] sm:$0xff]  }
 0x40d   :  { %v4231_v2 = vpop.eup %4230 }
 0x40e   :  { %v3128_v10 = vmul.f32 %v4231_v2, %v4229_v7  ;;  %v4270_v7 = vld [vmem:[#allocation3 + $0x160] sm:$0xff]  }
 0x410   :  { %v3130_v35 = vpack.c.bf16 %v3128_v10, %v3128_v10  ;;  %3129 = vst [vmem:[#allocation10] sm:$0xff] %v3128_v10  ;;  %v4272_v10 = vld [vmem:[#allocation3 + $0x170] sm:$0xff]  }
 0x412   :  { %v3138_v34 = vrot.slane %v3130_v35, %v4577_v24 }
 0x414   :  { %v3139_v63 = vcombine.high %v3138_v34, %v3138_v34  ;;  %v5780_v55 = vrot.slane %v3138_v34, %v4577_v24  ;;  %v4273_v34 = vld [vmem:[#allocation3 + $0x178] sm:$0xff]  }
 0x416   :  { %v5783_v28 = vrot.slane %v3139_v63, %v4577_v24  ;;  %v3655_v14 = vpack.i.b16 %v5780_v55, %v5780_v55  ;;  %v3157_v51 = vunpack.i.h.s16 %v5780_v55  ;;  %v3154_v50 = vcombine.high %v5780_v55, %v5780_v55  ;;  %v4274_v55 = vld [vmem:[#allocation3 + $0x180] sm:$0xff]  }
 0x418   :  { %v3168_v21 = vrot.slane %v3655_v14, %v4586_v36  ;;  %v5790_v39 = vcombine.high %v5783_v28, %v5783_v28  ;;  %v3210_v44 = vpack.i.b16 %v3157_v51, %v3157_v51  ;;  %v3656_v46 = vpack.i.b16 %v5783_v28, %v5783_v28  ;;  %v4276_v14 = vld [vmem:[#allocation3 + $0x190] sm:$0xff]  }
 0x419   :  { %v3159_v5 = vunpack.i.h.s16 %v5783_v28  ;;  %v3657_v31 = vpack.i.b16 %v3154_v50, %v3154_v50  ;;  %v3161_v2 = vunpack.i.h.s16 %v3154_v50  ;;  %v4275_v28 = vld [vmem:[#allocation3 + $0x188] sm:$0xff]  }
 0x41a   :  { %3993 = vmatmul.mubr.bf16.vlgmr.msra.gmra.mrb[4].mxu1 %v3168_v21  ;;  %v3163_v11 = vunpack.i.h.s16 %v5790_v39  ;;  %v3214_v25 = vrot.slane %v3210_v44, %v4586_v36  ;;  %v3260_v48 = vrot.slane %v3656_v46, %v4586_v36  ;;  %v4277_v21 = vld [vmem:[#allocation3 + $0x198] sm:$0xff]  }
 0x41b   :  { %3997 = vmatpush3.bf16.msra.mxu1 %v4234_v52  ;;  %4012 = vmatprep.mubr.msk.bf16.mxu1 %vm5903_vm4, %v4405_v0  ;;  %v3302_v9 = vpack.i.b16 %v3159_v5, %v3159_v5  ;;  %v3352_v4 = vrot.slane %v3657_v31, %v4586_v36  ;;  %v3394_v35 = vpack.i.b16 %v3161_v2, %v3161_v2  ;;  %v4279_v52 = vld [vmem:[#allocation3 + $0x1a8] sm:$0xff]  }
 0x41c   :  { %3998 = vmatprep.subr.bf16.mxu1 %v4405_v0  ;;  %v3486_v24 = vpack.i.b16 %v3163_v11, %v3163_v11  ;;  %v4278_v11 = vld [vmem:[#allocation3 + $0x1a0] sm:$0xff]  }
 0x41d   :  { %v3306_v22 = vrot.slane %v3302_v9, %v4586_v36  ;;  %v3398_v63 = vrot.slane %v3394_v35, %v4586_v36 }
 0x41e   :  { %v3490_v32 = vrot.slane %v3486_v24, %v4586_v36  ;;  %v4280_v24 = vld [vmem:[#allocation3 + $0x1b0] sm:$0xff]  }
 0x41f   :  { %3999 = vmatpush3.bf16.msra.mxu1 %v4235_v30  ;;  %v4281_v30 = vld [vmem:[#allocation3 + $0x1b8] sm:$0xff]  }
 0x420   :  { %4133 = vmatmul.mubr.bf16.vlgmr.msra.gmra.mrb[128].mxu0 %v3490_v32  ;;  %4000 = vmatprep.subr.bf16.mxu1 %v4405_v0  ;;  %v3658_v32 = vpack.i.b16 %v5790_v39, %v5790_v39 }
 0x423   :  { %4001 = vmatpush3.bf16.msra.mxu1 %v4236_v27  ;;  %v3444_v27 = vrot.slane %v3658_v32, %v4586_v36 }
 0x424   :  { %4002 = vmatprep.subr.bf16.mxu1 %v4405_v0 }
 0x427   :  { %4003 = vmatpush3.bf16.msra.mxu1 %v4237_v47 }
 0x428   :  { %4004 = vmatprep.subr.bf16.mxu1 %v4405_v0 }
 0x42b   :  { %4005 = vmatpush3.bf16.msra.mxu1 %v4238_v29 }
 0x42c   :  { %4006 = vmatprep.subr.bf16.mxu1 %v4405_v0 }
 0x42f   :  { %4007 = vmatpush3.bf16.msra.mxu1 %v4239_v19 }
 0x430   :  { %4008 = vmatprep.subr.bf16.mxu1 %v4405_v0 }
 0x433   :  { %4009 = vmatpush3.bf16.msra.mxu1 %v4240_v61 }
 0x434   :  { %4010 = vmatprep.subr.bf16.mxu1 %v4405_v0 }
 0x437   :  { %4011 = vmatpush3.bf16.msra.mxu1 %v4241_v16 }
 0x438   :  { %4016 = vmatprep.subr.bf16.mxu1 %v4405_v0 }
 0x43a   :  { %4013 = vmatmul.mubr.bf16.vlgmr.msra.gmra.mrb[8].mxu1 %v3214_v25 }
 0x43b   :  { %4017 = vmatpush3.bf16.msra.mxu1 %v4242_v12  ;;  %4032 = vmatprep.mubr.msk.bf16.mxu1 %vm5903_vm4, %v4405_v0 }
 0x43c   :  { %4018 = vmatprep.subr.bf16.mxu1 %v4405_v0 }
 0x43f   :  { %4019 = vmatpush3.bf16.msra.mxu1 %v4243_v49 }
 0x440   :  { %4020 = vmatprep.subr.bf16.mxu1 %v4405_v0 }
 0x443   :  { %4021 = vmatpush3.bf16.msra.mxu1 %v4244_v18 }
 0x444   :  { %4022 = vmatprep.subr.bf16.mxu1 %v4405_v0 }
 0x447   :  { %4023 = vmatpush3.bf16.msra.mxu1 %v4245_v59 }
 0x448   :  { %4024 = vmatprep.subr.bf16.mxu1 %v4405_v0 }
 0x44b   :  { %4025 = vmatpush3.bf16.msra.mxu1 %v4246_v43 }
 0x44c   :  { %4026 = vmatprep.subr.bf16.mxu1 %v4405_v0 }
 0x44f   :  { %4027 = vmatpush3.bf16.msra.mxu1 %v4247_v41 }
 0x450   :  { %4028 = vmatprep.subr.bf16.mxu1 %v4405_v0 }
 0x453   :  { %4029 = vmatpush3.bf16.msra.mxu1 %v4248_v13 }
 0x454   :  { %4030 = vmatprep.subr.bf16.mxu1 %v4405_v0 }
 0x457   :  { %4031 = vmatpush3.bf16.msra.mxu1 %v4249_v45 }
 0x458   :  { %4036 = vmatprep.subr.bf16.mxu1 %v4405_v0 }
 0x45a   :  { %4033 = vmatmul.mubr.bf16.vlgmr.msra.gmra.mrb[12].mxu1 %v3260_v48 }
 0x45b   :  { %4037 = vmatpush3.bf16.msra.mxu1 %v4250_v20  ;;  %4052 = vmatprep.mubr.msk.bf16.mxu1 %vm5903_vm4, %v4405_v0 }
 0x45c   :  { %4038 = vmatprep.subr.bf16.mxu1 %v4405_v0 }
 0x45f   :  { %4039 = vmatpush3.bf16.msra.mxu1 %v4251_v57 }
 0x460   :  { %4040 = vmatprep.subr.bf16.mxu1 %v4405_v0 }
 0x463   :  { %4041 = vmatpush3.bf16.msra.mxu1 %v4252_v6 }
 0x464   :  { %4042 = vmatprep.subr.bf16.mxu1 %v4405_v0 }
 0x467   :  { %4043 = vmatpush3.bf16.msra.mxu1 %v4253_v56 }
 0x468   :  { %4044 = vmatprep.subr.bf16.mxu1 %v4405_v0 }
 0x46b   :  { %4045 = vmatpush3.bf16.msra.mxu1 %v4254_v3 }
 0x46c   :  { %4046 = vmatprep.subr.bf16.mxu1 %v4405_v0 }
 0x46f   :  { %4047 = vmatpush3.bf16.msra.mxu1 %v4255_v40 }
 0x470   :  { %4048 = vmatprep.subr.bf16.mxu1 %v4405_v0 }
 0x473   :  { %4049 = vmatpush3.bf16.msra.mxu1 %v4256_v53 }
 0x474   :  { %4050 = vmatprep.subr.bf16.mxu1 %v4405_v0 }
 0x477   :  { %4051 = vmatpush3.bf16.msra.mxu1 %v4257_v33 }
 0x478   :  { %4056 = vmatprep.subr.bf16.mxu1 %v4405_v0 }
 0x47a   :  { %4053 = vmatmul.mubr.bf16.vlgmr.msra.gmra.mrb[16].mxu1 %v3306_v22 }
 0x47b   :  { %4057 = vmatpush3.bf16.msra.mxu1 %v4258_v60  ;;  %4072 = vmatprep.mubr.msk.bf16.mxu1 %vm5903_vm4, %v4405_v0 }
 0x47c   :  { %4058 = vmatprep.subr.bf16.mxu1 %v4405_v0 }
 0x47f   :  { %4059 = vmatpush3.bf16.msra.mxu1 %v4259_v26 }
 0x480   :  { %4060 = vmatprep.subr.bf16.mxu1 %v4405_v0 }
 0x483   :  { %4061 = vmatpush3.bf16.msra.mxu1 %v4260_v37 }
 0x484   :  { %4062 = vmatprep.subr.bf16.mxu1 %v4405_v0 }
 0x487   :  { %4063 = vmatpush3.bf16.msra.mxu1 %v4261_v1 }
 0x488   :  { %4064 = vmatprep.subr.bf16.mxu1 %v4405_v0 }
 0x48b   :  { %4065 = vmatpush3.bf16.msra.mxu1 %v4262_v15 }
 0x48c   :  { %4066 = vmatprep.subr.bf16.mxu1 %v4405_v0 }
 0x48f   :  { %4067 = vmatpush3.bf16.msra.mxu1 %v4263_v54 }
 0x490   :  { %4068 = vmatprep.subr.bf16.mxu1 %v4405_v0 }
 0x493   :  { %4069 = vmatpush3.bf16.msra.mxu1 %v4264_v8 }
 0x494   :  { %4070 = vmatprep.subr.bf16.mxu1 %v4405_v0 }
 0x497   :  { %4071 = vmatpush3.bf16.msra.mxu1 %v4265_v62 }
 0x498   :  { %4076 = vmatprep.subr.bf16.mxu1 %v4405_v0 }
 0x49a   :  { %4073 = vmatmul.mubr.bf16.vlgmr.msra.gmra.mrb[20].mxu1 %v3352_v4 }
 0x49b   :  { %4077 = vmatpush3.bf16.msra.mxu1 %v4266_v38  ;;  %4092 = vmatprep.mubr.msk.bf16.mxu1 %vm5903_vm4, %v4405_v0 }
 0x49c   :  { %4078 = vmatprep.subr.bf16.mxu1 %v4405_v0 }
 0x49f   :  { %4079 = vmatpush3.bf16.msra.mxu1 %v4267_v23 }
 0x4a0   :  { %4080 = vmatprep.subr.bf16.mxu1 %v4405_v0 }
 0x4a3   :  { %4081 = vmatpush3.bf16.msra.mxu1 %v4268_v58 }
 0x4a4   :  { %4082 = vmatprep.subr.bf16.mxu1 %v4405_v0 }
 0x4a7   :  { %4083 = vmatpush3.bf16.msra.mxu1 %v4269_v17 }
 0x4a8   :  { %4084 = vmatprep.subr.bf16.mxu1 %v4405_v0 }
 0x4ab   :  { %4085 = vmatpush3.bf16.msra.mxu1 %v4270_v7 }
 0x4ac   :  { %4086 = vmatprep.subr.bf16.mxu1 %v4405_v0 }
 0x4af   :  { %4087 = vmatpush3.bf16.msra.mxu1 %v4271_v42 }
 0x4b0   :  { %4088 = vmatprep.subr.bf16.mxu1 %v4405_v0 }
 0x4b3   :  { %4089 = vmatpush3.bf16.msra.mxu1 %v4272_v10 }
 0x4b4   :  { %4090 = vmatprep.subr.bf16.mxu1 %v4405_v0 }
 0x4b7   :  { %4091 = vmatpush3.bf16.msra.mxu1 %v4273_v34 }
 0x4b8   :  { %4096 = vmatprep.subr.bf16.mxu1 %v4405_v0 }
 0x4ba   :  { %4093 = vmatmul.mubr.bf16.vlgmr.msra.gmra.mrb[24].mxu1 %v3398_v63 }
 0x4bb   :  { %4097 = vmatpush3.bf16.msra.mxu1 %v4274_v55  ;;  %4112 = vmatprep.mubr.msk.bf16.mxu1 %vm5903_vm4, %v4405_v0 }
 0x4bc   :  { %4098 = vmatprep.subr.bf16.mxu1 %v4405_v0 }
 0x4bf   :  { %4099 = vmatpush3.bf16.msra.mxu1 %v4275_v28 }
 0x4c0   :  { %4100 = vmatprep.subr.bf16.mxu1 %v4405_v0 }
 0x4c3   :  { %4101 = vmatpush3.bf16.msra.mxu1 %v4276_v14 }
 0x4c4   :  { %4102 = vmatprep.subr.bf16.mxu1 %v4405_v0 }
 0x4c7   :  { %4103 = vmatpush3.bf16.msra.mxu1 %v4277_v21 }
 0x4c8   :  { %4104 = vmatprep.subr.bf16.mxu1 %v4405_v0 }
 0x4cb   :  { %4105 = vmatpush3.bf16.msra.mxu1 %v4278_v11 }
 0x4cc   :  { %4106 = vmatprep.subr.bf16.mxu1 %v4405_v0 }
 0x4cf   :  { %4107 = vmatpush3.bf16.msra.mxu1 %v4279_v52 }
 0x4d0   :  { %4108 = vmatprep.subr.bf16.mxu1 %v4405_v0 }
 0x4d3   :  { %4109 = vmatpush3.bf16.msra.mxu1 %v4280_v24 }
 0x4d4   :  { %4110 = vmatprep.subr.bf16.mxu1 %v4405_v0 }
 0x4d7   :  { %4111 = vmatpush3.bf16.msra.mxu1 %v4281_v30 }
 0x4da   :  { %4113 = vmatmul.mubr.bf16.vlgmr.msra.gmra.mrb[28].mxu1 %v3444_v27 }
 0x4ed   :  { %v3204_v47 = vpop.f32.mrb[4].mxu1 }
 0x4ee   :  { %3532 = vst [vmem:[#allocation9] sm:$0x1] %v3204_v47  ;;  %v3994_v29 = vpop.f32.mrb[5].mxu1 }
 0x4ef   :  { %v3207_v19 = vpop.f32.mrb[6].mxu1 }
 0x4f0   :  { %v3995_v51 = vpop.f32.mrb[7].mxu1 }
 0x4f3   :  { %v3526_v61 = vpop.f32.mrb[128].mxu0 }
 0x4f4   :  { %3539 = vst [vmem:[#allocation9 + $0x7] sm:$0x1] %v3526_v61  ;;  %v4134_v44 = vpop.f32.mrb[129].mxu0 }
 0x4f5   :  { %v3529_v16 = vpop.f32.mrb[130].mxu0 }
 0x4f6   :  { %v4135_v25 = vpop.f32.mrb[131].mxu0 }
 0x50d   :  { %v3250_v12 = vpop.f32.mrb[8].mxu1 }
 0x50e   :  { %3533 = vst [vmem:[#allocation9 + $0x1] sm:$0x1] %v3250_v12  ;;  %v4014_v0 = vpop.f32.mrb[9].mxu1 }
 0x50f   :  { %v3253_v49 = vpop.f32.mrb[10].mxu1 }
 0x510   :  { %v4015_v39 = vpop.f32.mrb[11].mxu1 }
 0x52d   :  { %v3296_v18 = vpop.f32.mrb[12].mxu1 }
 0x52e   :  { %3534 = vst [vmem:[#allocation9 + $0x2] sm:$0x1] %v3296_v18  ;;  %v4034_v59 = vpop.f32.mrb[13].mxu1 }
 0x52f   :  { %v3299_v36 = vpop.f32.mrb[14].mxu1 }
 0x530   :  { %v4035_v43 = vpop.f32.mrb[15].mxu1 }
 0x531   :  { %4359 = shalt.err (!%p4356_p0)
}
 0x532   :  { %s4360_s16 = scalar_lea.hbm %s5900_s9, 128 }
 0x533   :  { %p4361_p1 = scmp.ne.s32.totalorder %s5900_s9, %s4360_s16  ;;  %p4364_p2 = scmp.lt.u32.totalorder %s4360_s16, %s5900_s9 }
 0x535   :  { %p4366_p3 = pnand %p4364_p2, %p4361_p1 }
 0x537   :  { %4369 = shalt.err (!%p4366_p3)
}
 0x538   :  { %3561 = dma.vmem_to_hbm [thread:$0]  %s3559_s2, 128, %s5900_s9, [#allocation11]  }
 0x539   :  { %s4409_s25 = smov [#allocation9]  }
 0x53a   :  { %s3545_s0 = sshll.u32 %s4409_s25, 4  ;;  %s3546_s0 = int_to_ptr.vmem [resolvable:$true] %s3545_s0 }
 0x53b   :  { %s4370_s9 = scalar_lea.vmem %s3546_s0, 128  ;;  %p4375_p5 = scmp.lt.s32.totalorder %s3546_s0, %s3546_s0 }
 0x53c   :  { %p4371_p4 = scmp.ne.s32.totalorder %s3546_s0, %s4370_s9  ;;  %p4376_p6 = scmp.lt.s32.totalorder %s4370_s9, %s4370_s9 }
 0x53e   :  { %p4377_p7 = por %p4376_p6, %p4375_p5 }
 0x540   :  { %p4378_p8 = pnand %p4377_p7, %p4371_p4 }
 0x54d   :  { %v3342_v41 = vpop.f32.mrb[16].mxu1 }
 0x54e   :  { %3535 = vst [vmem:[#allocation9 + $0x3] sm:$0x1] %v3342_v41  ;;  %v4054_v13 = vpop.f32.mrb[17].mxu1 }
 0x54f   :  { %v3345_v46 = vpop.f32.mrb[18].mxu1 }
 0x550   :  { %v4055_v45 = vpop.f32.mrb[19].mxu1 }
 0x56d   :  { %v3388_v48 = vpop.f32.mrb[20].mxu1 }
 0x56e   :  { %3536 = vst [vmem:[#allocation9 + $0x4] sm:$0x1] %v3388_v48  ;;  %v4074_v20 = vpop.f32.mrb[21].mxu1 }
 0x56f   :  { %v3391_v57 = vpop.f32.mrb[22].mxu1 }
 0x570   :  { %v4075_v6 = vpop.f32.mrb[23].mxu1 }
 0x58d   :  { %v3434_v56 = vpop.f32.mrb[24].mxu1 }
 0x58e   :  { %3537 = vst [vmem:[#allocation9 + $0x5] sm:$0x1] %v3434_v56  ;;  %v4094_v3 = vpop.f32.mrb[25].mxu1 }
 0x58f   :  { %v3437_v40 = vpop.f32.mrb[26].mxu1 }
 0x590   :  { %v4095_v5 = vpop.f32.mrb[27].mxu1 }
 0x5ad   :  { %v3480_v53 = vpop.f32.mrb[28].mxu1 }
 0x5ae   :  { %3538 = vst [vmem:[#allocation9 + $0x6] sm:$0x1] %v3480_v53  ;;  %v4114_v9 = vpop.f32.mrb[29].mxu1 }
 0x5af   :  { %v3483_v33 = vpop.f32.mrb[30].mxu1 }
 0x5b0   :  { %4381 = shalt.err (!%p4378_p8)
}
 0x5b1   :  { %s4382_s21 = scalar_lea.hbm %s5899_s8, 128 }
 0x5b2   :  { %p4383_p9 = scmp.ne.s32.totalorder %s5899_s8, %s4382_s21  ;;  %p4386_p10 = scmp.lt.u32.totalorder %s4382_s21, %s5899_s8 }
 0x5b4   :  { %p4388_p11 = pnand %p4386_p10, %p4383_p9 }
 0x5b6   :  { %4391 = shalt.err (!%p4388_p11)
}
 0x5b7   :  { %s4410_s27 = smov 16   ;;  %s4411_s28 = smov 1   ;;  %v4115_v22 = vpop.f32.mrb[31].mxu1 }
 0x5b8   :  { %3551 = dma.vmem_to_hbm [thread:$0]  %s3546_s0, 128, %s5899_s8, [#allocation5], %s4410_s27, %s4410_s27, %s4411_s28  }
 0x5b9   :  { %4396 = dma.done.wait [#allocation5], 128  }
 0x5ba   :  { %4397 = vsyncadd [#allocation5], 4294967168 }
 0x5bb   :  { %4398 = dma.done.wait [#allocation11], 128  }
 0x5bc   :  { %4399 = vsyncadd [#allocation11], 4294967168 }
 0x5bd   :  { %3568 = vsyncpa [#allocation4], 1 }
 0x5be   :  { %3569 = vsyncpa [#allocation7], 1 }
 0x5bf   :  { %3570 = vsyncpa [#allocation5], 1 }
 0x5c0   :  { %3571 = vsyncpa [#allocation11], 1 }

</bundles_post_ra>
